<compile_context>
chip_gen: v5e
topology: v5e:2x2
jax: 0.10.0
libtpu: 0.0.40
codegen_flags: <defaults>
</compile_context>

<pallas_src>
import math
import functools

import jax
import jax.numpy as jnp
from jax.experimental import pallas as pl
from jax.experimental.pallas import tpu as pltpu

NEG_INF = float("-inf")
LN_EPS = 1e-5

# Per-layer stacked parameter names, in the exact order the fused kernel expects them.
PER_LAYER_NAMES = [
    "sa_wq", "sa_wk", "sa_wv", "sa_bq", "sa_bk", "sa_bv", "sa_wo", "sa_bo",
    "ln1_g", "ln1_b",
    "ca_wq", "ca_wk", "ca_wv", "ca_bq", "ca_bk", "ca_bv", "ca_wo", "ca_bo",
    "ln2_g", "ln2_b",
    "ff_w1", "ff_b1", "ff_w2", "ff_b2",
    "ln3_g", "ln3_b",
]


def _pick_tile(dim, target):
    """Largest clean tile: `target` if it divides `dim`, else the full dim (toy shapes)."""
    if dim <= target or dim % target != 0:
        return dim
    return target


# --------------------------------------------------------------------------
# Kernel 1: fused decoder stack (all layers, all three sub-blocks per layer)
# --------------------------------------------------------------------------
def _decoder_stack_kernel(
        kpm_ref, x_ref, mem_ref,
        sa_wq, sa_wk, sa_wv, sa_bq, sa_bk, sa_bv, sa_wo, sa_bo, ln1_g, ln1_b,
        ca_wq, ca_wk, ca_wv, ca_bq, ca_bk, ca_bv, ca_wo, ca_bo, ln2_g, ln2_b,
        ff_w1, ff_b1, ff_w2, ff_b2, ln3_g, ln3_b,
        o_ref,
        x_vmem, ctx_vmem,
        *, nhead, scale, use_mask):
    """grid = (B, L); b parallel, l arbitrary.  x stays in x_vmem (f32) across layers."""
    layer = pl.program_id(1)
    n_layers = pl.num_programs(1)

    # Load the residual stream into VMEM scratch on the first layer of each batch row.
    @pl.when(layer == 0)
    def _():
        x_vmem[...] = x_ref[0]

    x = x_vmem[...]                                  # [T, H] f32
    T, H = x.shape
    d = H // nhead

    # Causal + key-padding mask, built in-kernel, [T, T]; never repeated per head.
    if use_mask:
        row = jax.lax.broadcasted_iota(jnp.int32, (T, T), 0)
        col = jax.lax.broadcasted_iota(jnp.int32, (T, T), 1)
        self_mask = jnp.where(col <= row, 0.0, NEG_INF) + kpm_ref[0]   # [T,T] + [1,T]
    else:
        self_mask = None

    def layer_norm(y, g_ref, b_ref):
        mu = jnp.mean(y, axis=-1, keepdims=True)
        var = jnp.mean((y - mu) ** 2, axis=-1, keepdims=True)
        return (y - mu) * jax.lax.rsqrt(var + LN_EPS) * g_ref[0] + b_ref[0]

    def mha(q_in16, kv_in16, wq, wk, wv, bq, bk, bv, wo, bo, mask):
        # Full-width QKV matmuls (separate weights -> no unaligned lane slices of weights).
        q = jnp.dot(q_in16, wq[0], preferred_element_type=jnp.float32) + bq[0]   # [T,H]
        k = jnp.dot(kv_in16, wk[0], preferred_element_type=jnp.float32) + bk[0]  # [S,H]
        v = jnp.dot(kv_in16, wv[0], preferred_element_type=jnp.float32) + bv[0]  # [S,H]
        # Per-head attention; contexts written into one [T,H] buffer so the output
        # projection is a SINGLE full-width matmul after the loop.
        for h in range(nhead):
            sl = slice(h * d, (h + 1) * d)
            s = jax.lax.dot_general(q[:, sl].astype(jnp.bfloat16),
                                    k[:, sl].astype(jnp.bfloat16),
                                    (((1,), (1,)), ((), ())),
                                    preferred_element_type=jnp.float32) * scale
            if mask is not None:
                s = s + mask
            m = jnp.max(s, axis=-1, keepdims=True)
            m = jnp.where(m == NEG_INF, 0.0, m)          # guard fully-masked rows
            p = jnp.exp(s - m)
            lsum = jnp.sum(p, axis=-1, keepdims=True)
            lsum = jnp.where(lsum == 0.0, 1.0, lsum)
            p = p * pl.reciprocal(lsum, approx=True)
            ctx_vmem[:, sl] = jnp.dot(p.astype(jnp.bfloat16),
                                      v[:, sl].astype(jnp.bfloat16),
                                      preferred_element_type=jnp.float32)
        return jnp.dot(ctx_vmem[...].astype(jnp.bfloat16), wo[0],
                       preferred_element_type=jnp.float32) + bo[0]

    # ---- self-attention + LN1 ----
    x16 = x.astype(jnp.bfloat16)
    attn = mha(x16, x16,
               sa_wq, sa_wk, sa_wv, sa_bq, sa_bk, sa_bv, sa_wo, sa_bo, self_mask)
    x = layer_norm(x + attn, ln1_g, ln1_b)

    # ---- cross-attention on encoder memory (bf16) + LN2; memory mask is all-zeros ----
    attn = mha(x.astype(jnp.bfloat16), mem_ref[0],
               ca_wq, ca_wk, ca_wv, ca_bq, ca_bk, ca_bv, ca_wo, ca_bo, None)
    x = layer_norm(x + attn, ln2_g, ln2_b)

    # ---- FFN + LN3 ----
    h1 = jnp.dot(x.astype(jnp.bfloat16), ff_w1[0],
                 preferred_element_type=jnp.float32) + ff_b1[0]
    h1 = jnp.maximum(h1, 0.0)
    h2 = jnp.dot(h1.astype(jnp.bfloat16), ff_w2[0],
                 preferred_element_type=jnp.float32) + ff_b2[0]
    x = layer_norm(x + h2, ln3_g, ln3_b)

    x_vmem[...] = x

    @pl.when(layer == n_layers - 1)
    def _():
        o_ref[0] = x.astype(o_ref.dtype)


def decoder_stack(x, mem_bf16, kpm3, stacked, *, nhead, scale, use_mask):
    """x: [B,T,H] f32; mem_bf16: [B,S,H] bf16; kpm3: [B,1,T] f32 -> [B,T,H] bf16."""
    B, T, H = x.shape
    S = mem_bf16.shape[1]
    L = stacked["sa_wq"].shape[0]

    layer_args = [stacked[n] for n in PER_LAYER_NAMES]
    layer_specs = [pl.BlockSpec((1,) + a.shape[1:], lambda b, l: (l, 0, 0))
                   for a in layer_args]
    in_specs = ([pl.BlockSpec((1, 1, T), lambda b, l: (b, 0, 0)),
                 pl.BlockSpec((1, T, H), lambda b, l: (b, 0, 0)),
                 pl.BlockSpec((1, S, H), lambda b, l: (b, 0, 0))]
                + layer_specs)

    kern = functools.partial(_decoder_stack_kernel, nhead=nhead, scale=scale,
                             use_mask=use_mask)
    return pl.pallas_call(
        kern,
        out_shape=jax.ShapeDtypeStruct((B, T, H), jnp.bfloat16),
        grid=(B, L),
        in_specs=in_specs,
        out_specs=pl.BlockSpec((1, T, H), lambda b, l: (b, 0, 0)),
        scratch_shapes=[pltpu.VMEM((T, H), jnp.float32),     # resident residual stream
                        pltpu.VMEM((T, H), jnp.float32)],    # per-head context assembly
        compiler_params=pltpu.CompilerParams(
            dimension_semantics=("parallel", "arbitrary"),
            vmem_limit_bytes=48 * 1024 * 1024),
    )(kpm3, x, mem_bf16, *layer_args)


# --------------------------------------------------------------------------
# Kernel 2: tiled matmul + bias (final vocab projection), bf16 input, f32 accumulate
# --------------------------------------------------------------------------
def _matmul_bias_kernel(x_ref, w_ref, b_ref, o_ref, acc_ref):
    @pl.when(pl.program_id(2) == 0)
    def _():
        acc_ref[...] = jnp.zeros_like(acc_ref)
    acc_ref[...] += jnp.dot(x_ref[...], w_ref[...], preferred_element_type=jnp.float32)

    @pl.when(pl.program_id(2) == pl.num_programs(2) - 1)
    def _():
        o_ref[...] = acc_ref[...] + b_ref[...]


def linear_bias_tiled(x_bf16, w_t, b, *, tm_target=256, tn_target=512, tk_target=512):
    M, K = x_bf16.shape
    N = w_t.shape[1]
    tm = _pick_tile(M, tm_target)
    tn = _pick_tile(N, tn_target)
    tk = _pick_tile(K, tk_target)
    # NOTE: on v6e/v5e (128 MiB VMEM) tm/tn can be raised further; 48 MiB keeps v7x safe.
    return pl.pallas_call(
        _matmul_bias_kernel,
        out_shape=jax.ShapeDtypeStruct((M, N), jnp.float32),
        grid_spec=pltpu.PrefetchScalarGridSpec(
            num_scalar_prefetch=0,
            grid=(M // tm, N // tn, K // tk),
            in_specs=[pl.BlockSpec((tm, tk), lambda i, j, k: (i, k)),
                      pl.BlockSpec((tk, tn), lambda i, j, k: (k, j)),
                      pl.BlockSpec((1, tn), lambda i, j, k: (0, j))],
            out_specs=pl.BlockSpec((tm, tn), lambda i, j, k: (i, j)),
            scratch_shapes=[pltpu.VMEM((tm, tn), jnp.float32)]),
        compiler_params=pltpu.CompilerParams(
            dimension_semantics=("parallel", "parallel", "arbitrary"),
            vmem_limit_bytes=48 * 1024 * 1024),
    )(x_bf16, w_t, b.reshape(1, N))


# ------------------------------- Model glue -------------------------------
def make_positional_encoding(d_model, max_len=1000):
    pos = jnp.arange(max_len, dtype=jnp.float32)[:, None]
    div = jnp.exp(jnp.arange(0, d_model, 2, dtype=jnp.float32)
                  * (-math.log(10000.0) / d_model))
    pe = jnp.zeros((max_len, d_model), jnp.float32)
    pe = pe.at[:, 0::2].set(jnp.sin(pos * div))
    pe = pe.at[:, 1::2].set(jnp.cos(pos * div))
    return pe


def init_params(key, hidden, vocab, ffn, n_layers, max_len=1000):
    H, F, L = hidden, ffn, n_layers

    def normal(k, shape):
        return 0.02 * jax.random.normal(k, shape, jnp.float32)

    key, ke, kp = jax.random.split(key, 3)
    emb = normal(ke, (vocab, H)).at[0].set(0.0)                  # padding_idx=0 -> zero row
    proj_w_t = normal(kp, (H, vocab)).astype(jnp.bfloat16)       # pre-transposed, bf16
    proj_b = jnp.zeros((vocab,), jnp.float32)

    n_keys = 20
    ks = jax.random.split(key, L * n_keys)

    def wmat(i, j, shape):                                       # bf16, pre-transposed [in,out]
        return normal(ks[i * n_keys + j], shape).astype(jnp.bfloat16)

    def bvec(i, j, width):                                       # f32 bias row [1,width]
        return normal(ks[i * n_keys + j], (1, width))

    def stack(fn):
        return jnp.stack([fn(i) for i in range(L)], axis=0)

    stacked = dict(
        sa_wq=stack(lambda i: wmat(i, 0, (H, H))),
        sa_wk=stack(lambda i: wmat(i, 1, (H, H))),
        sa_wv=stack(lambda i: wmat(i, 2, (H, H))),
        sa_wo=stack(lambda i: wmat(i, 3, (H, H))),
        sa_bq=stack(lambda i: bvec(i, 4, H)),
        sa_bk=stack(lambda i: bvec(i, 5, H)),
        sa_bv=stack(lambda i: bvec(i, 6, H)),
        sa_bo=stack(lambda i: bvec(i, 7, H)),
        ca_wq=stack(lambda i: wmat(i, 8, (H, H))),
        ca_wk=stack(lambda i: wmat(i, 9, (H, H))),
        ca_wv=stack(lambda i: wmat(i, 10, (H, H))),
        ca_wo=stack(lambda i: wmat(i, 11, (H, H))),
        ca_bq=stack(lambda i: bvec(i, 12, H)),
        ca_bk=stack(lambda i: bvec(i, 13, H)),
        ca_bv=stack(lambda i: bvec(i, 14, H)),
        ca_bo=stack(lambda i: bvec(i, 15, H)),
        ff_w1=stack(lambda i: wmat(i, 16, (H, F))),
        ff_b1=stack(lambda i: bvec(i, 17, F)),
        ff_w2=stack(lambda i: wmat(i, 18, (F, H))),
        ff_b2=stack(lambda i: bvec(i, 19, H)),
        ln1_g=jnp.ones((L, 1, H), jnp.float32), ln1_b=jnp.zeros((L, 1, H), jnp.float32),
        ln2_g=jnp.ones((L, 1, H), jnp.float32), ln2_b=jnp.zeros((L, 1, H), jnp.float32),
        ln3_g=jnp.ones((L, 1, H), jnp.float32), ln3_b=jnp.zeros((L, 1, H), jnp.float32),
    )
    return dict(emb=emb, pe=make_positional_encoding(H, max_len),
                proj_w_t=proj_w_t, proj_b=proj_b, stacked=stacked)


def trans_decoder_forward(params, inputs, gt, pidx=0, use_masks=True, nhead=4):
    """inputs: [B, S, H] encoder memory; gt: [B, T] int32 tokens -> [B, T, vocab]."""
    B, T = gt.shape
    _, S, H = inputs.shape
    V = params["proj_w_t"].shape[1]
    d = H // nhead
    scale = 1.0 / math.sqrt(d)

    # key-padding additive row, [B, 1, T]; causal mask is built inside the kernel.
    kpm3 = jnp.where(gt == pidx, NEG_INF, 0.0).astype(jnp.float32).reshape(B, 1, T)

    # embedding gather + positional encoding (plain-JAX glue)
    x = params["emb"][gt] + params["pe"][:T][None, :, :]          # [B, T, H] f32
    mem16 = inputs.astype(jnp.bfloat16)                           # [B, S, H] bf16

    h_out = decoder_stack(x, mem16, kpm3, params["stacked"],
                          nhead=nhead, scale=scale, use_mask=use_masks)   # [B,T,H] bf16

    logits = linear_bias_tiled(h_out.reshape(B * T, H), params["proj_w_t"], params["proj_b"])
    return logits.reshape(B, T, V)                                 # [B, T, V] f32


# ----------------------- pure-JAX reference (f32) --------------------------
def _reference_forward(params, inputs, gt, pidx=0, use_masks=True, nhead=4):
    B, T = gt.shape
    _, S, H = inputs.shape
    d = H // nhead
    scale = 1.0 / math.sqrt(d)
    st = params["stacked"]
    L = st["sa_wq"].shape[0]

    x = params["emb"][gt] + params["pe"][:T][None, :, :]
    mem = inputs
    kpm = jnp.where(gt == pidx, NEG_INF, 0.0)
    causal = jnp.where(jnp.tril(jnp.ones((T, T), bool)), 0.0, NEG_INF)
    self_mask = (causal[None] + kpm[:, None, :]) if use_masks else None

    def split_heads(t):
        Bq, Lq, _ = t.shape
        return t.reshape(Bq, Lq, nhead, d).transpose(0, 2, 1, 3)

    def mha(q_in, kv_in, wq, wk, wv, bq, bk, bv, wo, bo, mask):
        q = q_in @ wq.astype(jnp.float32) + bq[0]
        k = kv_in @ wk.astype(jnp.float32) + bk[0]
        v = kv_in @ wv.astype(jnp.float32) + bv[0]
        qh, kh, vh = split_heads(q), split_heads(k), split_heads(v)
        s = jnp.einsum("bhqd,bhkd->bhqk", qh, kh) * scale
        if mask is not None:
            s = s + mask[:, None, :, :]
        m = jnp.max(s, -1, keepdims=True)
        m = jnp.where(m == NEG_INF, 0.0, m)
        p = jnp.exp(s - m)
        l = jnp.sum(p, -1, keepdims=True)
        p = p / jnp.where(l == 0.0, 1.0, l)
        ctx = jnp.einsum("bhqk,bhkd->bhqd", p, vh)
        ctx = ctx.transpose(0, 2, 1, 3).reshape(q_in.shape[0], -1, H)
        return ctx @ wo.astype(jnp.float32) + bo[0]

    def ln(y, g, b):
        mu = jnp.mean(y, -1, keepdims=True)
        var = jnp.mean((y - mu) ** 2, -1, keepdims=True)
        return (y - mu) * jax.lax.rsqrt(var + LN_EPS) * g[0] + b[0]

    for i in range(L):
        g = lambda n: st[n][i]
        x = ln(x + mha(x, x, g("sa_wq"), g("sa_wk"), g("sa_wv"),
                       g("sa_bq"), g("sa_bk"), g("sa_bv"), g("sa_wo"), g("sa_bo"),
                       self_mask),
               g("ln1_g"), g("ln1_b"))
        x = ln(x + mha(x, mem, g("ca_wq"), g("ca_wk"), g("ca_wv"),
                       g("ca_bq"), g("ca_bk"), g("ca_bv"), g("ca_wo"), g("ca_bo"),
                       None),
               g("ln2_g"), g("ln2_b"))
        h = jnp.maximum(x @ g("ff_w1").astype(jnp.float32) + g("ff_b1")[0], 0.0)
        h = h @ g("ff_w2").astype(jnp.float32) + g("ff_b2")[0]
        x = ln(x + h, g("ln3_g"), g("ln3_b"))
    return x @ params["proj_w_t"].astype(jnp.float32) + params["proj_b"]


# ---------------------------------- main ----------------------------------
if __name__ == "__main__":
    B, T, S = 2, 8, 10
    hidden, vocab, ffn_dim, n_layers, nhead = 32, 16, 64, 2, 4

    key = jax.random.PRNGKey(0)
    k_params, k_inputs, k_gt = jax.random.split(key, 3)

    params = init_params(k_params, hidden, vocab, ffn_dim, n_layers)

    inputs = jax.random.normal(k_inputs, (B, S, hidden), jnp.float32)     # encoder memory
    gt = jax.random.randint(k_gt, (B, T), 1, vocab).astype(jnp.int32)     # target tokens
    gt = gt.at[0, -2:].set(0).at[1, -1:].set(0)                           # trailing pads (pidx=0)

    fwd = jax.jit(functools.partial(trans_decoder_forward,
                                    pidx=0, use_masks=True, nhead=nhead))
    out = jax.block_until_ready(fwd(params, inputs, gt))

    assert out.shape == (B, T, vocab), out.shape
    assert bool(jnp.all(jnp.isfinite(out)))

    ref = _reference_forward(params, inputs, gt, pidx=0, use_masks=True, nhead=nhead)
    max_err = float(jnp.max(jnp.abs(out - ref)))
    assert max_err < 5e-2, f"kernel vs reference max abs err {max_err}"

    print("KERNEL_OK")
</pallas_src>

<mosaic_0001>
module attributes {stable_mosaic.version = 11 : i64} {
  func.func @_matmul_bias_kernel(%arg0: i32, %arg1: i32, %arg2: i32, %arg3: memref<16x32xbf16, #tpu.memory_space<vmem>>, %arg4: memref<32x16xbf16, #tpu.memory_space<vmem>>, %arg5: memref<1x16xf32, #tpu.memory_space<vmem>>, %arg6: memref<16x16xf32, #tpu.memory_space<vmem>>, %arg7: memref<16x16xf32, #tpu.memory_space<vmem>>) attributes {dimension_semantics = [#tpu.dimension_semantics<parallel>, #tpu.dimension_semantics<parallel>, #tpu.dimension_semantics<arbitrary>], iteration_bounds = array<i64: 1, 1, 1>, scalar_prefetch = 0 : i64, scratch_operands = 1 : i64, tpu.core_type = #tpu.core_type<tc>, window_params = [{transform_indices = @transform_0, window_bounds = array<i64: 16, 32>}, {transform_indices = @transform_1, window_bounds = array<i64: 32, 16>}, {transform_indices = @transform_2, window_bounds = array<i64: 1, 16>}, {transform_indices = @transform_3, window_bounds = array<i64: 16, 16>}]} {
    %c0_i32 = arith.constant 0 : i32
    %0 = arith.cmpi eq, %arg2, %c0_i32 : i32
    %1 = arith.extui %0 : i1 to i32
    %c0_i32_0 = arith.constant 0 : i32
    %2 = arith.cmpi ne, %1, %c0_i32_0 : i32
    scf.if %2 {
      %cst_10 = arith.constant 0.000000e+00 : f32
      %12 = vector.broadcast %cst_10 : f32 to vector<16x16xf32>
      %c0_11 = arith.constant 0 : index
      %c0_12 = arith.constant 0 : index
      %13 = vector.load %arg7[%c0_11, %c0_12] : memref<16x16xf32, #tpu.memory_space<vmem>>, vector<16x16xf32>
      tpu.vector_store %arg7[%c0_11, %c0_12], %12 {strides = array<i32>} : memref<16x16xf32, #tpu.memory_space<vmem>>, vector<16x16xf32>,
    } else {
    }
    %c0 = arith.constant 0 : index
    %c0_1 = arith.constant 0 : index
    %3 = vector.load %arg7[%c0, %c0_1] : memref<16x16xf32, #tpu.memory_space<vmem>>, vector<16x16xf32>
    %c0_2 = arith.constant 0 : index
    %c0_3 = arith.constant 0 : index
    %4 = vector.load %arg3[%c0_2, %c0_3] : memref<16x32xbf16, #tpu.memory_space<vmem>>, vector<16x32xbf16>
    %c0_4 = arith.constant 0 : index
    %c0_5 = arith.constant 0 : index
    %5 = vector.load %arg4[%c0_4, %c0_5] : memref<32x16xbf16, #tpu.memory_space<vmem>>, vector<32x16xbf16>
    %cst = arith.constant dense<0.000000e+00> : vector<16x16xf32>
    %6 = tpu.matmul %4, %5, %cst {dimension_numbers = #tpu.dot_dimension_numbers<[1], [0], [0], [1], [0, 0, 1, 1], [], []>} : vector<16x32xbf16>, vector<32x16xbf16>, vector<16x16xf32> -> vector<16x16xf32>
    %7 = arith.addf %3, %6 : vector<16x16xf32>
    %c0_6 = arith.constant 0 : index
    %c0_7 = arith.constant 0 : index
    %8 = vector.load %arg7[%c0_6, %c0_7] : memref<16x16xf32, #tpu.memory_space<vmem>>, vector<16x16xf32>
    tpu.vector_store %arg7[%c0_6, %c0_7], %7 {strides = array<i32>} : memref<16x16xf32, #tpu.memory_space<vmem>>, vector<16x16xf32>,
    %c0_i32_8 = arith.constant 0 : i32
    %9 = arith.cmpi eq, %arg2, %c0_i32_8 : i32
    %10 = arith.extui %9 : i1 to i32
    %c0_i32_9 = arith.constant 0 : i32
    %11 = arith.cmpi ne, %10, %c0_i32_9 : i32
    scf.if %11 {
      %c0_10 = arith.constant 0 : index
      %c0_11 = arith.constant 0 : index
      %12 = vector.load %arg7[%c0_10, %c0_11] : memref<16x16xf32, #tpu.memory_space<vmem>>, vector<16x16xf32>
      %c0_12 = arith.constant 0 : index
      %c0_13 = arith.constant 0 : index
      %13 = vector.load %arg5[%c0_12, %c0_13] : memref<1x16xf32, #tpu.memory_space<vmem>>, vector<1x16xf32>
      %14 = vector.broadcast %13 : vector<1x16xf32> to vector<16x16xf32>
      %15 = arith.addf %12, %14 : vector<16x16xf32>
      %c0_14 = arith.constant 0 : index
      %c0_15 = arith.constant 0 : index
      %16 = vector.load %arg6[%c0_14, %c0_15] : memref<16x16xf32, #tpu.memory_space<vmem>>, vector<16x16xf32>
      tpu.vector_store %arg6[%c0_14, %c0_15], %15 {strides = array<i32>} : memref<16x16xf32, #tpu.memory_space<vmem>>, vector<16x16xf32>,
    } else {
    }
    return
  }
  func.func @transform_0(%arg0: i32, %arg1: i32, %arg2: i32) -> (i32, i32) {
    %c0_i32 = arith.constant 0 : i32
    return %arg0, %arg2 : i32, i32
  }
  func.func @transform_1(%arg0: i32, %arg1: i32, %arg2: i32) -> (i32, i32) {
    %c0_i32 = arith.constant 0 : i32
    return %arg2, %arg1 : i32, i32
  }
  func.func @transform_2(%arg0: i32, %arg1: i32, %arg2: i32) -> (i32, i32) {
    %c0_i32 = arith.constant 0 : i32
    %c0_i32_0 = arith.constant 0 : i32
    return %c0_i32, %arg1 : i32, i32
  }
  func.func @transform_3(%arg0: i32, %arg1: i32, %arg2: i32) -> (i32, i32) {
    %c0_i32 = arith.constant 0 : i32
    return %arg0, %arg1 : i32, i32
  }
}

module attributes {stable_mosaic.version = 11 : i64} {
  func.func @_decoder_stack_kernel(%arg0: i32, %arg1: i32, %arg2: memref<1x1x8xf32, #tpu.memory_space<vmem>>, %arg3: memref<1x8x32xf32, #tpu.memory_space<vmem>>, %arg4: memref<1x10x32xbf16, #tpu.memory_space<vmem>>, %arg5: memref<1x32x32xbf16, #tpu.memory_space<vmem>>, %arg6: memref<1x32x32xbf16, #tpu.memory_space<vmem>>, %arg7: memref<1x32x32xbf16, #tpu.memory_space<vmem>>, %arg8: memref<1x1x32xf32, #tpu.memory_space<vmem>>, %arg9: memref<1x1x32xf32, #tpu.memory_space<vmem>>, %arg10: memref<1x1x32xf32, #tpu.memory_space<vmem>>, %arg11: memref<1x32x32xbf16, #tpu.memory_space<vmem>>, %arg12: memref<1x1x32xf32, #tpu.memory_space<vmem>>, %arg13: memref<1x1x32xf32, #tpu.memory_space<vmem>>, %arg14: memref<1x1x32xf32, #tpu.memory_space<vmem>>, %arg15: memref<1x32x32xbf16, #tpu.memory_space<vmem>>, %arg16: memref<1x32x32xbf16, #tpu.memory_space<vmem>>, %arg17: memref<1x32x32xbf16, #tpu.memory_space<vmem>>, %arg18: memref<1x1x32xf32, #tpu.memory_space<vmem>>, %arg19: memref<1x1x32xf32, #tpu.memory_space<vmem>>, %arg20: memref<1x1x32xf32, #tpu.memory_space<vmem>>, %arg21: memref<1x32x32xbf16, #tpu.memory_space<vmem>>, %arg22: memref<1x1x32xf32, #tpu.memory_space<vmem>>, %arg23: memref<1x1x32xf32, #tpu.memory_space<vmem>>, %arg24: memref<1x1x32xf32, #tpu.memory_space<vmem>>, %arg25: memref<1x32x64xbf16, #tpu.memory_space<vmem>>, %arg26: memref<1x1x64xf32, #tpu.memory_space<vmem>>, %arg27: memref<1x64x32xbf16, #tpu.memory_space<vmem>>, %arg28: memref<1x1x32xf32, #tpu.memory_space<vmem>>, %arg29: memref<1x1x32xf32, #tpu.memory_space<vmem>>, %arg30: memref<1x1x32xf32, #tpu.memory_space<vmem>>, %arg31: memref<1x8x32xbf16, #tpu.memory_space<vmem>>, %arg32: memref<8x32xf32, #tpu.memory_space<vmem>>, %arg33: memref<8x32xf32, #tpu.memory_space<vmem>>) attributes {dimension_semantics = [#tpu.dimension_semantics<parallel>, #tpu.dimension_semantics<arbitrary>], iteration_bounds = array<i64: 2, 2>, scalar_prefetch = 0 : i64, scratch_operands = 2 : i64, tpu.core_type = #tpu.core_type<tc>, window_params = [{transform_indices = @transform_0, window_bounds = array<i64: 1, 1, 8>}, {transform_indices = @transform_1, window_bounds = array<i64: 1, 8, 32>}, {transform_indices = @transform_2, window_bounds = array<i64: 1, 10, 32>}, {transform_indices = @transform_3, window_bounds = array<i64: 1, 32, 32>}, {transform_indices = @transform_4, window_bounds = array<i64: 1, 32, 32>}, {transform_indices = @transform_5, window_bounds = array<i64: 1, 32, 32>}, {transform_indices = @transform_6, window_bounds = array<i64: 1, 1, 32>}, {transform_indices = @transform_7, window_bounds = array<i64: 1, 1, 32>}, {transform_indices = @transform_8, window_bounds = array<i64: 1, 1, 32>}, {transform_indices = @transform_9, window_bounds = array<i64: 1, 32, 32>}, {transform_indices = @transform_10, window_bounds = array<i64: 1, 1, 32>}, {transform_indices = @transform_11, window_bounds = array<i64: 1, 1, 32>}, {transform_indices = @transform_12, window_bounds = array<i64: 1, 1, 32>}, {transform_indices = @transform_13, window_bounds = array<i64: 1, 32, 32>}, {transform_indices = @transform_14, window_bounds = array<i64: 1, 32, 32>}, {transform_indices = @transform_15, window_bounds = array<i64: 1, 32, 32>}, {transform_indices = @transform_16, window_bounds = array<i64: 1, 1, 32>}, {transform_indices = @transform_17, window_bounds = array<i64: 1, 1, 32>}, {transform_indices = @transform_18, window_bounds = array<i64: 1, 1, 32>}, {transform_indices = @transform_19, window_bounds = array<i64: 1, 32, 32>}, {transform_indices = @transform_20, window_bounds = array<i64: 1, 1, 32>}, {transform_indices = @transform_21, window_bounds = array<i64: 1, 1, 32>}, {transform_indices = @transform_22, window_bounds = array<i64: 1, 1, 32>}, {transform_indices = @transform_23, window_bounds = array<i64: 1, 32, 64>}, {transform_indices = @transform_24, window_bounds = array<i64: 1, 1, 64>}, {transform_indices = @transform_25, window_bounds = array<i64: 1, 64, 32>}, {transform_indices = @transform_26, window_bounds = array<i64: 1, 1, 32>}, {transform_indices = @transform_27, window_bounds = array<i64: 1, 1, 32>}, {transform_indices = @transform_28, window_bounds = array<i64: 1, 1, 32>}, {transform_indices = @transform_29, window_bounds = array<i64: 1, 8, 32>}]} {
    %c0_i32 = arith.constant 0 : i32
    %0 = arith.cmpi eq, %arg1, %c0_i32 : i32
    %1 = arith.extui %0 : i1 to i32
    %c0_i32_0 = arith.constant 0 : i32
    %2 = arith.cmpi ne, %1, %c0_i32_0 : i32
    scf.if %2 {
      %c0_205 = arith.constant 0 : index
      %c0_206 = arith.constant 0 : index
      %c0_207 = arith.constant 0 : index
      %425 = vector.load %arg3[%c0_205, %c0_206, %c0_207] : memref<1x8x32xf32, #tpu.memory_space<vmem>>, vector<1x8x32xf32>
      %426 = vector.shape_cast %425 : vector<1x8x32xf32> to vector<8x32xf32>
      %c0_208 = arith.constant 0 : index
      %c0_209 = arith.constant 0 : index
      %427 = vector.load %arg32[%c0_208, %c0_209] : memref<8x32xf32, #tpu.memory_space<vmem>>, vector<8x32xf32>
      tpu.vector_store %arg32[%c0_208, %c0_209], %426 {strides = array<i32>} : memref<8x32xf32, #tpu.memory_space<vmem>>, vector<8x32xf32>,
    } else {
    }
    %c0 = arith.constant 0 : index
    %c0_1 = arith.constant 0 : index
    %3 = vector.load %arg32[%c0, %c0_1] : memref<8x32xf32, #tpu.memory_space<vmem>>, vector<8x32xf32>
    %4 = tpu.iota {dimensions = array<i32: 0>} : vector<8x8xi32>
    %5 = tpu.iota {dimensions = array<i32: 1>} : vector<8x8xi32>
    %6 = arith.cmpi sle, %5, %4 : vector<8x8xi32>
    %cst = arith.constant 0.000000e+00 : f32
    %cst_2 = arith.constant 0xFF800000 : f32
    %7 = vector.broadcast %cst : f32 to vector<8x8xf32>
    %8 = vector.broadcast %cst_2 : f32 to vector<8x8xf32>
    %9 = arith.select %6, %7, %8 : vector<8x8xi1>, vector<8x8xf32>
    %c0_3 = arith.constant 0 : index
    %c0_4 = arith.constant 0 : index
    %c0_5 = arith.constant 0 : index
    %10 = vector.load %arg2[%c0_3, %c0_4, %c0_5] : memref<1x1x8xf32, #tpu.memory_space<vmem>>, vector<1x1x8xf32>
    %11 = vector.shape_cast %10 : vector<1x1x8xf32> to vector<1x8xf32>
    %12 = vector.broadcast %11 : vector<1x8xf32> to vector<8x8xf32>
    %13 = arith.addf %9, %12 : vector<8x8xf32>
    %14 = arith.truncf %3 : vector<8x32xf32> to vector<8x32xbf16>
    %c0_6 = arith.constant 0 : index
    %c0_7 = arith.constant 0 : index
    %c0_8 = arith.constant 0 : index
    %15 = vector.load %arg5[%c0_6, %c0_7, %c0_8] : memref<1x32x32xbf16, #tpu.memory_space<vmem>>, vector<1x32x32xbf16>
    %16 = vector.shape_cast %15 : vector<1x32x32xbf16> to vector<32x32xbf16>
    %cst_9 = arith.constant dense<0.000000e+00> : vector<8x32xf32>
    %17 = tpu.matmul %14, %16, %cst_9 {dimension_numbers = #tpu.dot_dimension_numbers<[1], [0], [0], [1], [0, 0, 1, 1], [], []>} : vector<8x32xbf16>, vector<32x32xbf16>, vector<8x32xf32> -> vector<8x32xf32>
    %c0_10 = arith.constant 0 : index
    %c0_11 = arith.constant 0 : index
    %c0_12 = arith.constant 0 : index
    %18 = vector.load %arg8[%c0_10, %c0_11, %c0_12] : memref<1x1x32xf32, #tpu.memory_space<vmem>>, vector<1x1x32xf32>
    %19 = vector.shape_cast %18 : vector<1x1x32xf32> to vector<1x32xf32>
    %20 = vector.broadcast %19 : vector<1x32xf32> to vector<8x32xf32>
    %21 = arith.addf %17, %20 : vector<8x32xf32>
    %c0_13 = arith.constant 0 : index
    %c0_14 = arith.constant 0 : index
    %c0_15 = arith.constant 0 : index
    %22 = vector.load %arg6[%c0_13, %c0_14, %c0_15] : memref<1x32x32xbf16, #tpu.memory_space<vmem>>, vector<1x32x32xbf16>
    %23 = vector.shape_cast %22 : vector<1x32x32xbf16> to vector<32x32xbf16>
    %cst_16 = arith.constant dense<0.000000e+00> : vector<8x32xf32>
    %24 = tpu.matmul %14, %23, %cst_16 {dimension_numbers = #tpu.dot_dimension_numbers<[1], [0], [0], [1], [0, 0, 1, 1], [], []>} : vector<8x32xbf16>, vector<32x32xbf16>, vector<8x32xf32> -> vector<8x32xf32>
    %c0_17 = arith.constant 0 : index
    %c0_18 = arith.constant 0 : index
    %c0_19 = arith.constant 0 : index
    %25 = vector.load %arg9[%c0_17, %c0_18, %c0_19] : memref<1x1x32xf32, #tpu.memory_space<vmem>>, vector<1x1x32xf32>
    %26 = vector.shape_cast %25 : vector<1x1x32xf32> to vector<1x32xf32>
    %27 = vector.broadcast %26 : vector<1x32xf32> to vector<8x32xf32>
    %28 = arith.addf %24, %27 : vector<8x32xf32>
    %c0_20 = arith.constant 0 : index
    %c0_21 = arith.constant 0 : index
    %c0_22 = arith.constant 0 : index
    %29 = vector.load %arg7[%c0_20, %c0_21, %c0_22] : memref<1x32x32xbf16, #tpu.memory_space<vmem>>, vector<1x32x32xbf16>
    %30 = vector.shape_cast %29 : vector<1x32x32xbf16> to vector<32x32xbf16>
    %cst_23 = arith.constant dense<0.000000e+00> : vector<8x32xf32>
    %31 = tpu.matmul %14, %30, %cst_23 {dimension_numbers = #tpu.dot_dimension_numbers<[1], [0], [0], [1], [0, 0, 1, 1], [], []>} : vector<8x32xbf16>, vector<32x32xbf16>, vector<8x32xf32> -> vector<8x32xf32>
    %c0_24 = arith.constant 0 : index
    %c0_25 = arith.constant 0 : index
    %c0_26 = arith.constant 0 : index
    %32 = vector.load %arg10[%c0_24, %c0_25, %c0_26] : memref<1x1x32xf32, #tpu.memory_space<vmem>>, vector<1x1x32xf32>
    %33 = vector.shape_cast %32 : vector<1x1x32xf32> to vector<1x32xf32>
    %34 = vector.broadcast %33 : vector<1x32xf32> to vector<8x32xf32>
    %35 = arith.addf %31, %34 : vector<8x32xf32>
    %36 = vector.extract_strided_slice %21 {offsets = [0, 0], sizes = [8, 8], strides = [1, 1]} : vector<8x32xf32> to vector<8x8xf32>
    %37 = arith.truncf %36 : vector<8x8xf32> to vector<8x8xbf16>
    %38 = vector.extract_strided_slice %28 {offsets = [0, 0], sizes = [8, 8], strides = [1, 1]} : vector<8x32xf32> to vector<8x8xf32>
    %39 = arith.truncf %38 : vector<8x8xf32> to vector<8x8xbf16>
    %cst_27 = arith.constant dense<0.000000e+00> : vector<8x8xf32>
    %40 = tpu.matmul %37, %39, %cst_27 {dimension_numbers = #tpu.dot_dimension_numbers<[1], [1], [0], [0], [0, 0, 1, 0], [], []>} : vector<8x8xbf16>, vector<8x8xbf16>, vector<8x8xf32> -> vector<8x8xf32>
    %cst_28 = arith.constant 0.353553385 : f32
    %41 = vector.broadcast %cst_28 : f32 to vector<8x8xf32>
    %42 = arith.mulf %40, %41 : vector<8x8xf32>
    %43 = arith.addf %42, %13 : vector<8x8xf32>
    %cst_29 = arith.constant dense<0xFF800000> : vector<8xf32>
    %44 = vector.multi_reduction <maximumf>, %43, %cst_29 [1] : vector<8x8xf32> to vector<8xf32>
    %45 = vector.shape_cast %44 : vector<8xf32> to vector<8x1xf32>
    %cst_30 = arith.constant 0xFF800000 : f32
    %46 = vector.broadcast %cst_30 : f32 to vector<8x1xf32>
    %47 = arith.cmpf oeq, %45, %46 : vector<8x1xf32>
    %cst_31 = arith.constant 0.000000e+00 : f32
    %48 = vector.broadcast %cst_31 : f32 to vector<8x1xf32>
    %49 = arith.select %47, %48, %45 : vector<8x1xi1>, vector<8x1xf32>
    %50 = vector.broadcast %49 : vector<8x1xf32> to vector<8x8xf32>
    %51 = arith.subf %43, %50 : vector<8x8xf32>
    %52 = math.exp %51 : vector<8x8xf32>
    %cst_32 = arith.constant dense<0.000000e+00> : vector<8xf32>
    %53 = vector.multi_reduction <add>, %52, %cst_32 [1] : vector<8x8xf32> to vector<8xf32>
    %54 = vector.shape_cast %53 : vector<8xf32> to vector<8x1xf32>
    %cst_33 = arith.constant 0.000000e+00 : f32
    %55 = vector.broadcast %cst_33 : f32 to vector<8x1xf32>
    %56 = arith.cmpf oeq, %54, %55 : vector<8x1xf32>
    %cst_34 = arith.constant 1.000000e+00 : f32
    %57 = vector.broadcast %cst_34 : f32 to vector<8x1xf32>
    %58 = arith.select %56, %57, %54 : vector<8x1xi1>, vector<8x1xf32>
    %59 = tpu.reciprocal %58 {approx = true} : vector<8x1xf32> -> vector<8x1xf32>
    %60 = vector.broadcast %59 : vector<8x1xf32> to vector<8x8xf32>
    %61 = arith.mulf %52, %60 : vector<8x8xf32>
    %62 = arith.truncf %61 : vector<8x8xf32> to vector<8x8xbf16>
    %63 = vector.extract_strided_slice %35 {offsets = [0, 0], sizes = [8, 8], strides = [1, 1]} : vector<8x32xf32> to vector<8x8xf32>
    %64 = arith.truncf %63 : vector<8x8xf32> to vector<8x8xbf16>
    %cst_35 = arith.constant dense<0.000000e+00> : vector<8x8xf32>
    %65 = tpu.matmul %62, %64, %cst_35 {dimension_numbers = #tpu.dot_dimension_numbers<[1], [0], [0], [1], [0, 0, 1, 1], [], []>} : vector<8x8xbf16>, vector<8x8xbf16>, vector<8x8xf32> -> vector<8x8xf32>
    %c0_36 = arith.constant 0 : index
    %c0_37 = arith.constant 0 : index
    %66 = vector.load %arg33[%c0_36, %c0_37] : memref<8x32xf32, #tpu.memory_space<vmem>>, vector<8x8xf32>
    tpu.vector_store %arg33[%c0_36, %c0_37], %65 {strides = array<i32>} : memref<8x32xf32, #tpu.memory_space<vmem>>, vector<8x8xf32>,
    %67 = vector.extract_strided_slice %21 {offsets = [0, 8], sizes = [8, 8], strides = [1, 1]} : vector<8x32xf32> to vector<8x8xf32>
    %68 = arith.truncf %67 : vector<8x8xf32> to vector<8x8xbf16>
    %69 = vector.extract_strided_slice %28 {offsets = [0, 8], sizes = [8, 8], strides = [1, 1]} : vector<8x32xf32> to vector<8x8xf32>
    %70 = arith.truncf %69 : vector<8x8xf32> to vector<8x8xbf16>
    %cst_38 = arith.constant dense<0.000000e+00> : vector<8x8xf32>
    %71 = tpu.matmul %68, %70, %cst_38 {dimension_numbers = #tpu.dot_dimension_numbers<[1], [1], [0], [0], [0, 0, 1, 0], [], []>} : vector<8x8xbf16>, vector<8x8xbf16>, vector<8x8xf32> -> vector<8x8xf32>
    %cst_39 = arith.constant 0.353553385 : f32
    %72 = vector.broadcast %cst_39 : f32 to vector<8x8xf32>
    %73 = arith.mulf %71, %72 : vector<8x8xf32>
    %74 = arith.addf %73, %13 : vector<8x8xf32>
    %cst_40 = arith.constant dense<0xFF800000> : vector<8xf32>
    %75 = vector.multi_reduction <maximumf>, %74, %cst_40 [1] : vector<8x8xf32> to vector<8xf32>
    %76 = vector.shape_cast %75 : vector<8xf32> to vector<8x1xf32>
    %cst_41 = arith.constant 0xFF800000 : f32
    %77 = vector.broadcast %cst_41 : f32 to vector<8x1xf32>
    %78 = arith.cmpf oeq, %76, %77 : vector<8x1xf32>
    %cst_42 = arith.constant 0.000000e+00 : f32
    %79 = vector.broadcast %cst_42 : f32 to vector<8x1xf32>
    %80 = arith.select %78, %79, %76 : vector<8x1xi1>, vector<8x1xf32>
    %81 = vector.broadcast %80 : vector<8x1xf32> to vector<8x8xf32>
    %82 = arith.subf %74, %81 : vector<8x8xf32>
    %83 = math.exp %82 : vector<8x8xf32>
    %cst_43 = arith.constant dense<0.000000e+00> : vector<8xf32>
    %84 = vector.multi_reduction <add>, %83, %cst_43 [1] : vector<8x8xf32> to vector<8xf32>
    %85 = vector.shape_cast %84 : vector<8xf32> to vector<8x1xf32>
    %cst_44 = arith.constant 0.000000e+00 : f32
    %86 = vector.broadcast %cst_44 : f32 to vector<8x1xf32>
    %87 = arith.cmpf oeq, %85, %86 : vector<8x1xf32>
    %cst_45 = arith.constant 1.000000e+00 : f32
    %88 = vector.broadcast %cst_45 : f32 to vector<8x1xf32>
    %89 = arith.select %87, %88, %85 : vector<8x1xi1>, vector<8x1xf32>
    %90 = tpu.reciprocal %89 {approx = true} : vector<8x1xf32> -> vector<8x1xf32>
    %91 = vector.broadcast %90 : vector<8x1xf32> to vector<8x8xf32>
    %92 = arith.mulf %83, %91 : vector<8x8xf32>
    %93 = arith.truncf %92 : vector<8x8xf32> to vector<8x8xbf16>
    %94 = vector.extract_strided_slice %35 {offsets = [0, 8], sizes = [8, 8], strides = [1, 1]} : vector<8x32xf32> to vector<8x8xf32>
    %95 = arith.truncf %94 : vector<8x8xf32> to vector<8x8xbf16>
    %cst_46 = arith.constant dense<0.000000e+00> : vector<8x8xf32>
    %96 = tpu.matmul %93, %95, %cst_46 {dimension_numbers = #tpu.dot_dimension_numbers<[1], [0], [0], [1], [0, 0, 1, 1], [], []>} : vector<8x8xbf16>, vector<8x8xbf16>, vector<8x8xf32> -> vector<8x8xf32>
    %c0_47 = arith.constant 0 : index
    %c8 = arith.constant 8 : index
    %97 = vector.load %arg33[%c0_47, %c8] : memref<8x32xf32, #tpu.memory_space<vmem>>, vector<8x8xf32>
    tpu.vector_store %arg33[%c0_47, %c8], %96 {strides = array<i32>} : memref<8x32xf32, #tpu.memory_space<vmem>>, vector<8x8xf32>,
    %98 = vector.extract_strided_slice %21 {offsets = [0, 16], sizes = [8, 8], strides = [1, 1]} : vector<8x32xf32> to vector<8x8xf32>
    %99 = arith.truncf %98 : vector<8x8xf32> to vector<8x8xbf16>
    %100 = vector.extract_strided_slice %28 {offsets = [0, 16], sizes = [8, 8], strides = [1, 1]} : vector<8x32xf32> to vector<8x8xf32>
    %101 = arith.truncf %100 : vector<8x8xf32> to vector<8x8xbf16>
    %cst_48 = arith.constant dense<0.000000e+00> : vector<8x8xf32>
    %102 = tpu.matmul %99, %101, %cst_48 {dimension_numbers = #tpu.dot_dimension_numbers<[1], [1], [0], [0], [0, 0, 1, 0], [], []>} : vector<8x8xbf16>, vector<8x8xbf16>, vector<8x8xf32> -> vector<8x8xf32>
    %cst_49 = arith.constant 0.353553385 : f32
    %103 = vector.broadcast %cst_49 : f32 to vector<8x8xf32>
    %104 = arith.mulf %102, %103 : vector<8x8xf32>
    %105 = arith.addf %104, %13 : vector<8x8xf32>
    %cst_50 = arith.constant dense<0xFF800000> : vector<8xf32>
    %106 = vector.multi_reduction <maximumf>, %105, %cst_50 [1] : vector<8x8xf32> to vector<8xf32>
    %107 = vector.shape_cast %106 : vector<8xf32> to vector<8x1xf32>
    %cst_51 = arith.constant 0xFF800000 : f32
    %108 = vector.broadcast %cst_51 : f32 to vector<8x1xf32>
    %109 = arith.cmpf oeq, %107, %108 : vector<8x1xf32>
    %cst_52 = arith.constant 0.000000e+00 : f32
    %110 = vector.broadcast %cst_52 : f32 to vector<8x1xf32>
    %111 = arith.select %109, %110, %107 : vector<8x1xi1>, vector<8x1xf32>
    %112 = vector.broadcast %111 : vector<8x1xf32> to vector<8x8xf32>
    %113 = arith.subf %105, %112 : vector<8x8xf32>
    %114 = math.exp %113 : vector<8x8xf32>
    %cst_53 = arith.constant dense<0.000000e+00> : vector<8xf32>
    %115 = vector.multi_reduction <add>, %114, %cst_53 [1] : vector<8x8xf32> to vector<8xf32>
    %116 = vector.shape_cast %115 : vector<8xf32> to vector<8x1xf32>
    %cst_54 = arith.constant 0.000000e+00 : f32
    %117 = vector.broadcast %cst_54 : f32 to vector<8x1xf32>
    %118 = arith.cmpf oeq, %116, %117 : vector<8x1xf32>
    %cst_55 = arith.constant 1.000000e+00 : f32
    %119 = vector.broadcast %cst_55 : f32 to vector<8x1xf32>
    %120 = arith.select %118, %119, %116 : vector<8x1xi1>, vector<8x1xf32>
    %121 = tpu.reciprocal %120 {approx = true} : vector<8x1xf32> -> vector<8x1xf32>
    %122 = vector.broadcast %121 : vector<8x1xf32> to vector<8x8xf32>
    %123 = arith.mulf %114, %122 : vector<8x8xf32>
    %124 = arith.truncf %123 : vector<8x8xf32> to vector<8x8xbf16>
    %125 = vector.extract_strided_slice %35 {offsets = [0, 16], sizes = [8, 8], strides = [1, 1]} : vector<8x32xf32> to vector<8x8xf32>
    %126 = arith.truncf %125 : vector<8x8xf32> to vector<8x8xbf16>
    %cst_56 = arith.constant dense<0.000000e+00> : vector<8x8xf32>
    %127 = tpu.matmul %124, %126, %cst_56 {dimension_numbers = #tpu.dot_dimension_numbers<[1], [0], [0], [1], [0, 0, 1, 1], [], []>} : vector<8x8xbf16>, vector<8x8xbf16>, vector<8x8xf32> -> vector<8x8xf32>
    %c0_57 = arith.constant 0 : index
    %c16 = arith.constant 16 : index
    %128 = vector.load %arg33[%c0_57, %c16] : memref<8x32xf32, #tpu.memory_space<vmem>>, vector<8x8xf32>
    tpu.vector_store %arg33[%c0_57, %c16], %127 {strides = array<i32>} : memref<8x32xf32, #tpu.memory_space<vmem>>, vector<8x8xf32>,
    %129 = vector.extract_strided_slice %21 {offsets = [0, 24], sizes = [8, 8], strides = [1, 1]} : vector<8x32xf32> to vector<8x8xf32>
    %130 = arith.truncf %129 : vector<8x8xf32> to vector<8x8xbf16>
    %131 = vector.extract_strided_slice %28 {offsets = [0, 24], sizes = [8, 8], strides = [1, 1]} : vector<8x32xf32> to vector<8x8xf32>
    %132 = arith.truncf %131 : vector<8x8xf32> to vector<8x8xbf16>
    %cst_58 = arith.constant dense<0.000000e+00> : vector<8x8xf32>
    %133 = tpu.matmul %130, %132, %cst_58 {dimension_numbers = #tpu.dot_dimension_numbers<[1], [1], [0], [0], [0, 0, 1, 0], [], []>} : vector<8x8xbf16>, vector<8x8xbf16>, vector<8x8xf32> -> vector<8x8xf32>
    %cst_59 = arith.constant 0.353553385 : f32
    %134 = vector.broadcast %cst_59 : f32 to vector<8x8xf32>
    %135 = arith.mulf %133, %134 : vector<8x8xf32>
    %136 = arith.addf %135, %13 : vector<8x8xf32>
    %cst_60 = arith.constant dense<0xFF800000> : vector<8xf32>
    %137 = vector.multi_reduction <maximumf>, %136, %cst_60 [1] : vector<8x8xf32> to vector<8xf32>
    %138 = vector.shape_cast %137 : vector<8xf32> to vector<8x1xf32>
    %cst_61 = arith.constant 0xFF800000 : f32
    %139 = vector.broadcast %cst_61 : f32 to vector<8x1xf32>
    %140 = arith.cmpf oeq, %138, %139 : vector<8x1xf32>
    %cst_62 = arith.constant 0.000000e+00 : f32
    %141 = vector.broadcast %cst_62 : f32 to vector<8x1xf32>
    %142 = arith.select %140, %141, %138 : vector<8x1xi1>, vector<8x1xf32>
    %143 = vector.broadcast %142 : vector<8x1xf32> to vector<8x8xf32>
    %144 = arith.subf %136, %143 : vector<8x8xf32>
    %145 = math.exp %144 : vector<8x8xf32>
    %cst_63 = arith.constant dense<0.000000e+00> : vector<8xf32>
    %146 = vector.multi_reduction <add>, %145, %cst_63 [1] : vector<8x8xf32> to vector<8xf32>
    %147 = vector.shape_cast %146 : vector<8xf32> to vector<8x1xf32>
    %cst_64 = arith.constant 0.000000e+00 : f32
    %148 = vector.broadcast %cst_64 : f32 to vector<8x1xf32>
    %149 = arith.cmpf oeq, %147, %148 : vector<8x1xf32>
    %cst_65 = arith.constant 1.000000e+00 : f32
    %150 = vector.broadcast %cst_65 : f32 to vector<8x1xf32>
    %151 = arith.select %149, %150, %147 : vector<8x1xi1>, vector<8x1xf32>
    %152 = tpu.reciprocal %151 {approx = true} : vector<8x1xf32> -> vector<8x1xf32>
    %153 = vector.broadcast %152 : vector<8x1xf32> to vector<8x8xf32>
    %154 = arith.mulf %145, %153 : vector<8x8xf32>
    %155 = arith.truncf %154 : vector<8x8xf32> to vector<8x8xbf16>
    %156 = vector.extract_strided_slice %35 {offsets = [0, 24], sizes = [8, 8], strides = [1, 1]} : vector<8x32xf32> to vector<8x8xf32>
    %157 = arith.truncf %156 : vector<8x8xf32> to vector<8x8xbf16>
    %cst_66 = arith.constant dense<0.000000e+00> : vector<8x8xf32>
    %158 = tpu.matmul %155, %157, %cst_66 {dimension_numbers = #tpu.dot_dimension_numbers<[1], [0], [0], [1], [0, 0, 1, 1], [], []>} : vector<8x8xbf16>, vector<8x8xbf16>, vector<8x8xf32> -> vector<8x8xf32>
    %c0_67 = arith.constant 0 : index
    %c24 = arith.constant 24 : index
    %159 = vector.load %arg33[%c0_67, %c24] : memref<8x32xf32, #tpu.memory_space<vmem>>, vector<8x8xf32>
    tpu.vector_store %arg33[%c0_67, %c24], %158 {strides = array<i32>} : memref<8x32xf32, #tpu.memory_space<vmem>>, vector<8x8xf32>,
    %c0_68 = arith.constant 0 : index
    %c0_69 = arith.constant 0 : index
    %160 = vector.load %arg33[%c0_68, %c0_69] : memref<8x32xf32, #tpu.memory_space<vmem>>, vector<8x32xf32>
    %161 = arith.truncf %160 : vector<8x32xf32> to vector<8x32xbf16>
    %c0_70 = arith.constant 0 : index
    %c0_71 = arith.constant 0 : index
    %c0_72 = arith.constant 0 : index
    %162 = vector.load %arg11[%c0_70, %c0_71, %c0_72] : memref<1x32x32xbf16, #tpu.memory_space<vmem>>, vector<1x32x32xbf16>
    %163 = vector.shape_cast %162 : vector<1x32x32xbf16> to vector<32x32xbf16>
    %cst_73 = arith.constant dense<0.000000e+00> : vector<8x32xf32>
    %164 = tpu.matmul %161, %163, %cst_73 {dimension_numbers = #tpu.dot_dimension_numbers<[1], [0], [0], [1], [0, 0, 1, 1], [], []>} : vector<8x32xbf16>, vector<32x32xbf16>, vector<8x32xf32> -> vector<8x32xf32>
    %c0_74 = arith.constant 0 : index
    %c0_75 = arith.constant 0 : index
    %c0_76 = arith.constant 0 : index
    %165 = vector.load %arg12[%c0_74, %c0_75, %c0_76] : memref<1x1x32xf32, #tpu.memory_space<vmem>>, vector<1x1x32xf32>
    %166 = vector.shape_cast %165 : vector<1x1x32xf32> to vector<1x32xf32>
    %167 = vector.broadcast %166 : vector<1x32xf32> to vector<8x32xf32>
    %168 = arith.addf %164, %167 : vector<8x32xf32>
    %169 = arith.addf %3, %168 : vector<8x32xf32>
    %cst_77 = arith.constant dense<0.000000e+00> : vector<8xf32>
    %170 = vector.multi_reduction <add>, %169, %cst_77 [1] : vector<8x32xf32> to vector<8xf32>
    %171 = vector.shape_cast %170 : vector<8xf32> to vector<8x1xf32>
    %cst_78 = arith.constant 3.200000e+01 : f32
    %172 = vector.broadcast %cst_78 : f32 to vector<8x1xf32>
    %173 = arith.divf %171, %172 : vector<8x1xf32>
    %174 = vector.broadcast %173 : vector<8x1xf32> to vector<8x32xf32>
    %175 = arith.subf %169, %174 : vector<8x32xf32>
    %176 = arith.mulf %175, %175 : vector<8x32xf32>
    %cst_79 = arith.constant dense<0.000000e+00> : vector<8xf32>
    %177 = vector.multi_reduction <add>, %176, %cst_79 [1] : vector<8x32xf32> to vector<8xf32>
    %178 = vector.shape_cast %177 : vector<8xf32> to vector<8x1xf32>
    %cst_80 = arith.constant 3.200000e+01 : f32
    %179 = vector.broadcast %cst_80 : f32 to vector<8x1xf32>
    %180 = arith.divf %178, %179 : vector<8x1xf32>
    %181 = vector.broadcast %173 : vector<8x1xf32> to vector<8x32xf32>
    %182 = arith.subf %169, %181 : vector<8x32xf32>
    %cst_81 = arith.constant 9.99999974E-6 : f32
    %183 = vector.broadcast %cst_81 : f32 to vector<8x1xf32>
    %184 = arith.addf %180, %183 : vector<8x1xf32>
    %185 = math.rsqrt %184 : vector<8x1xf32>
    %186 = vector.broadcast %185 : vector<8x1xf32> to vector<8x32xf32>
    %187 = arith.mulf %182, %186 : vector<8x32xf32>
    %c0_82 = arith.constant 0 : index
    %c0_83 = arith.constant 0 : index
    %c0_84 = arith.constant 0 : index
    %188 = vector.load %arg13[%c0_82, %c0_83, %c0_84] : memref<1x1x32xf32, #tpu.memory_space<vmem>>, vector<1x1x32xf32>
    %189 = vector.shape_cast %188 : vector<1x1x32xf32> to vector<1x32xf32>
    %190 = vector.broadcast %189 : vector<1x32xf32> to vector<8x32xf32>
    %191 = arith.mulf %187, %190 : vector<8x32xf32>
    %c0_85 = arith.constant 0 : index
    %c0_86 = arith.constant 0 : index
    %c0_87 = arith.constant 0 : index
    %192 = vector.load %arg14[%c0_85, %c0_86, %c0_87] : memref<1x1x32xf32, #tpu.memory_space<vmem>>, vector<1x1x32xf32>
    %193 = vector.shape_cast %192 : vector<1x1x32xf32> to vector<1x32xf32>
    %194 = vector.broadcast %193 : vector<1x32xf32> to vector<8x32xf32>
    %195 = arith.addf %191, %194 : vector<8x32xf32>
    %196 = arith.truncf %195 : vector<8x32xf32> to vector<8x32xbf16>
    %c0_88 = arith.constant 0 : index
    %c0_89 = arith.constant 0 : index
    %c0_90 = arith.constant 0 : index
    %197 = vector.load %arg4[%c0_88, %c0_89, %c0_90] : memref<1x10x32xbf16, #tpu.memory_space<vmem>>, vector<1x10x32xbf16>
    %198 = vector.shape_cast %197 : vector<1x10x32xbf16> to vector<10x32xbf16>
    %c0_91 = arith.constant 0 : index
    %c0_92 = arith.constant 0 : index
    %c0_93 = arith.constant 0 : index
    %199 = vector.load %arg15[%c0_91, %c0_92, %c0_93] : memref<1x32x32xbf16, #tpu.memory_space<vmem>>, vector<1x32x32xbf16>
    %200 = vector.shape_cast %199 : vector<1x32x32xbf16> to vector<32x32xbf16>
    %cst_94 = arith.constant dense<0.000000e+00> : vector<8x32xf32>
    %201 = tpu.matmul %196, %200, %cst_94 {dimension_numbers = #tpu.dot_dimension_numbers<[1], [0], [0], [1], [0, 0, 1, 1], [], []>} : vector<8x32xbf16>, vector<32x32xbf16>, vector<8x32xf32> -> vector<8x32xf32>
    %c0_95 = arith.constant 0 : index
    %c0_96 = arith.constant 0 : index
    %c0_97 = arith.constant 0 : index
    %202 = vector.load %arg18[%c0_95, %c0_96, %c0_97] : memref<1x1x32xf32, #tpu.memory_space<vmem>>, vector<1x1x32xf32>
    %203 = vector.shape_cast %202 : vector<1x1x32xf32> to vector<1x32xf32>
    %204 = vector.broadcast %203 : vector<1x32xf32> to vector<8x32xf32>
    %205 = arith.addf %201, %204 : vector<8x32xf32>
    %c0_98 = arith.constant 0 : index
    %c0_99 = arith.constant 0 : index
    %c0_100 = arith.constant 0 : index
    %206 = vector.load %arg16[%c0_98, %c0_99, %c0_100] : memref<1x32x32xbf16, #tpu.memory_space<vmem>>, vector<1x32x32xbf16>
    %207 = vector.shape_cast %206 : vector<1x32x32xbf16> to vector<32x32xbf16>
    %cst_101 = arith.constant dense<0.000000e+00> : vector<10x32xf32>
    %208 = tpu.matmul %198, %207, %cst_101 {dimension_numbers = #tpu.dot_dimension_numbers<[1], [0], [0], [1], [0, 0, 1, 1], [], []>} : vector<10x32xbf16>, vector<32x32xbf16>, vector<10x32xf32> -> vector<10x32xf32>
    %c0_102 = arith.constant 0 : index
    %c0_103 = arith.constant 0 : index
    %c0_104 = arith.constant 0 : index
    %209 = vector.load %arg19[%c0_102, %c0_103, %c0_104] : memref<1x1x32xf32, #tpu.memory_space<vmem>>, vector<1x1x32xf32>
    %210 = vector.shape_cast %209 : vector<1x1x32xf32> to vector<1x32xf32>
    %211 = vector.broadcast %210 : vector<1x32xf32> to vector<10x32xf32>
    %212 = arith.addf %208, %211 : vector<10x32xf32>
    %c0_105 = arith.constant 0 : index
    %c0_106 = arith.constant 0 : index
    %c0_107 = arith.constant 0 : index
    %213 = vector.load %arg17[%c0_105, %c0_106, %c0_107] : memref<1x32x32xbf16, #tpu.memory_space<vmem>>, vector<1x32x32xbf16>
    %214 = vector.shape_cast %213 : vector<1x32x32xbf16> to vector<32x32xbf16>
    %cst_108 = arith.constant dense<0.000000e+00> : vector<10x32xf32>
    %215 = tpu.matmul %198, %214, %cst_108 {dimension_numbers = #tpu.dot_dimension_numbers<[1], [0], [0], [1], [0, 0, 1, 1], [], []>} : vector<10x32xbf16>, vector<32x32xbf16>, vector<10x32xf32> -> vector<10x32xf32>
    %c0_109 = arith.constant 0 : index
    %c0_110 = arith.constant 0 : index
    %c0_111 = arith.constant 0 : index
    %216 = vector.load %arg20[%c0_109, %c0_110, %c0_111] : memref<1x1x32xf32, #tpu.memory_space<vmem>>, vector<1x1x32xf32>
    %217 = vector.shape_cast %216 : vector<1x1x32xf32> to vector<1x32xf32>
    %218 = vector.broadcast %217 : vector<1x32xf32> to vector<10x32xf32>
    %219 = arith.addf %215, %218 : vector<10x32xf32>
    %220 = vector.extract_strided_slice %205 {offsets = [0, 0], sizes = [8, 8], strides = [1, 1]} : vector<8x32xf32> to vector<8x8xf32>
    %221 = arith.truncf %220 : vector<8x8xf32> to vector<8x8xbf16>
    %222 = vector.extract_strided_slice %212 {offsets = [0, 0], sizes = [10, 8], strides = [1, 1]} : vector<10x32xf32> to vector<10x8xf32>
    %223 = arith.truncf %222 : vector<10x8xf32> to vector<10x8xbf16>
    %cst_112 = arith.constant dense<0.000000e+00> : vector<8x10xf32>
    %224 = tpu.matmul %221, %223, %cst_112 {dimension_numbers = #tpu.dot_dimension_numbers<[1], [1], [0], [0], [0, 0, 1, 0], [], []>} : vector<8x8xbf16>, vector<10x8xbf16>, vector<8x10xf32> -> vector<8x10xf32>
    %cst_113 = arith.constant 0.353553385 : f32
    %225 = vector.broadcast %cst_113 : f32 to vector<8x10xf32>
    %226 = arith.mulf %224, %225 : vector<8x10xf32>
    %cst_114 = arith.constant dense<0xFF800000> : vector<8xf32>
    %227 = vector.multi_reduction <maximumf>, %226, %cst_114 [1] : vector<8x10xf32> to vector<8xf32>
    %228 = vector.shape_cast %227 : vector<8xf32> to vector<8x1xf32>
    %cst_115 = arith.constant 0xFF800000 : f32
    %229 = vector.broadcast %cst_115 : f32 to vector<8x1xf32>
    %230 = arith.cmpf oeq, %228, %229 : vector<8x1xf32>
    %cst_116 = arith.constant 0.000000e+00 : f32
    %231 = vector.broadcast %cst_116 : f32 to vector<8x1xf32>
    %232 = arith.select %230, %231, %228 : vector<8x1xi1>, vector<8x1xf32>
    %233 = vector.broadcast %232 : vector<8x1xf32> to vector<8x10xf32>
    %234 = arith.subf %226, %233 : vector<8x10xf32>
    %235 = math.exp %234 : vector<8x10xf32>
    %cst_117 = arith.constant dense<0.000000e+00> : vector<8xf32>
    %236 = vector.multi_reduction <add>, %235, %cst_117 [1] : vector<8x10xf32> to vector<8xf32>
    %237 = vector.shape_cast %236 : vector<8xf32> to vector<8x1xf32>
    %cst_118 = arith.constant 0.000000e+00 : f32
    %238 = vector.broadcast %cst_118 : f32 to vector<8x1xf32>
    %239 = arith.cmpf oeq, %237, %238 : vector<8x1xf32>
    %cst_119 = arith.constant 1.000000e+00 : f32
    %240 = vector.broadcast %cst_119 : f32 to vector<8x1xf32>
    %241 = arith.select %239, %240, %237 : vector<8x1xi1>, vector<8x1xf32>
    %242 = tpu.reciprocal %241 {approx = true} : vector<8x1xf32> -> vector<8x1xf32>
    %243 = vector.broadcast %242 : vector<8x1xf32> to vector<8x10xf32>
    %244 = arith.mulf %235, %243 : vector<8x10xf32>
    %245 = arith.truncf %244 : vector<8x10xf32> to vector<8x10xbf16>
    %246 = vector.extract_strided_slice %219 {offsets = [0, 0], sizes = [10, 8], strides = [1, 1]} : vector<10x32xf32> to vector<10x8xf32>
    %247 = arith.truncf %246 : vector<10x8xf32> to vector<10x8xbf16>
    %cst_120 = arith.constant dense<0.000000e+00> : vector<8x8xf32>
    %248 = tpu.matmul %245, %247, %cst_120 {dimension_numbers = #tpu.dot_dimension_numbers<[1], [0], [0], [1], [0, 0, 1, 1], [], []>} : vector<8x10xbf16>, vector<10x8xbf16>, vector<8x8xf32> -> vector<8x8xf32>
    %c0_121 = arith.constant 0 : index
    %c0_122 = arith.constant 0 : index
    %249 = vector.load %arg33[%c0_121, %c0_122] : memref<8x32xf32, #tpu.memory_space<vmem>>, vector<8x8xf32>
    tpu.vector_store %arg33[%c0_121, %c0_122], %248 {strides = array<i32>} : memref<8x32xf32, #tpu.memory_space<vmem>>, vector<8x8xf32>,
    %250 = vector.extract_strided_slice %205 {offsets = [0, 8], sizes = [8, 8], strides = [1, 1]} : vector<8x32xf32> to vector<8x8xf32>
    %251 = arith.truncf %250 : vector<8x8xf32> to vector<8x8xbf16>
    %252 = vector.extract_strided_slice %212 {offsets = [0, 8], sizes = [10, 8], strides = [1, 1]} : vector<10x32xf32> to vector<10x8xf32>
    %253 = arith.truncf %252 : vector<10x8xf32> to vector<10x8xbf16>
    %cst_123 = arith.constant dense<0.000000e+00> : vector<8x10xf32>
    %254 = tpu.matmul %251, %253, %cst_123 {dimension_numbers = #tpu.dot_dimension_numbers<[1], [1], [0], [0], [0, 0, 1, 0], [], []>} : vector<8x8xbf16>, vector<10x8xbf16>, vector<8x10xf32> -> vector<8x10xf32>
    %cst_124 = arith.constant 0.353553385 : f32
    %255 = vector.broadcast %cst_124 : f32 to vector<8x10xf32>
    %256 = arith.mulf %254, %255 : vector<8x10xf32>
    %cst_125 = arith.constant dense<0xFF800000> : vector<8xf32>
    %257 = vector.multi_reduction <maximumf>, %256, %cst_125 [1] : vector<8x10xf32> to vector<8xf32>
    %258 = vector.shape_cast %257 : vector<8xf32> to vector<8x1xf32>
    %cst_126 = arith.constant 0xFF800000 : f32
    %259 = vector.broadcast %cst_126 : f32 to vector<8x1xf32>
    %260 = arith.cmpf oeq, %258, %259 : vector<8x1xf32>
    %cst_127 = arith.constant 0.000000e+00 : f32
    %261 = vector.broadcast %cst_127 : f32 to vector<8x1xf32>
    %262 = arith.select %260, %261, %258 : vector<8x1xi1>, vector<8x1xf32>
    %263 = vector.broadcast %262 : vector<8x1xf32> to vector<8x10xf32>
    %264 = arith.subf %256, %263 : vector<8x10xf32>
    %265 = math.exp %264 : vector<8x10xf32>
    %cst_128 = arith.constant dense<0.000000e+00> : vector<8xf32>
    %266 = vector.multi_reduction <add>, %265, %cst_128 [1] : vector<8x10xf32> to vector<8xf32>
    %267 = vector.shape_cast %266 : vector<8xf32> to vector<8x1xf32>
    %cst_129 = arith.constant 0.000000e+00 : f32
    %268 = vector.broadcast %cst_129 : f32 to vector<8x1xf32>
    %269 = arith.cmpf oeq, %267, %268 : vector<8x1xf32>
    %cst_130 = arith.constant 1.000000e+00 : f32
    %270 = vector.broadcast %cst_130 : f32 to vector<8x1xf32>
    %271 = arith.select %269, %270, %267 : vector<8x1xi1>, vector<8x1xf32>
    %272 = tpu.reciprocal %271 {approx = true} : vector<8x1xf32> -> vector<8x1xf32>
    %273 = vector.broadcast %272 : vector<8x1xf32> to vector<8x10xf32>
    %274 = arith.mulf %265, %273 : vector<8x10xf32>
    %275 = arith.truncf %274 : vector<8x10xf32> to vector<8x10xbf16>
    %276 = vector.extract_strided_slice %219 {offsets = [0, 8], sizes = [10, 8], strides = [1, 1]} : vector<10x32xf32> to vector<10x8xf32>
    %277 = arith.truncf %276 : vector<10x8xf32> to vector<10x8xbf16>
    %cst_131 = arith.constant dense<0.000000e+00> : vector<8x8xf32>
    %278 = tpu.matmul %275, %277, %cst_131 {dimension_numbers = #tpu.dot_dimension_numbers<[1], [0], [0], [1], [0, 0, 1, 1], [], []>} : vector<8x10xbf16>, vector<10x8xbf16>, vector<8x8xf32> -> vector<8x8xf32>
    %c0_132 = arith.constant 0 : index
    %c8_133 = arith.constant 8 : index
    %279 = vector.load %arg33[%c0_132, %c8_133] : memref<8x32xf32, #tpu.memory_space<vmem>>, vector<8x8xf32>
    tpu.vector_store %arg33[%c0_132, %c8_133], %278 {strides = array<i32>} : memref<8x32xf32, #tpu.memory_space<vmem>>, vector<8x8xf32>,
    %280 = vector.extract_strided_slice %205 {offsets = [0, 16], sizes = [8, 8], strides = [1, 1]} : vector<8x32xf32> to vector<8x8xf32>
    %281 = arith.truncf %280 : vector<8x8xf32> to vector<8x8xbf16>
    %282 = vector.extract_strided_slice %212 {offsets = [0, 16], sizes = [10, 8], strides = [1, 1]} : vector<10x32xf32> to vector<10x8xf32>
    %283 = arith.truncf %282 : vector<10x8xf32> to vector<10x8xbf16>
    %cst_134 = arith.constant dense<0.000000e+00> : vector<8x10xf32>
    %284 = tpu.matmul %281, %283, %cst_134 {dimension_numbers = #tpu.dot_dimension_numbers<[1], [1], [0], [0], [0, 0, 1, 0], [], []>} : vector<8x8xbf16>, vector<10x8xbf16>, vector<8x10xf32> -> vector<8x10xf32>
    %cst_135 = arith.constant 0.353553385 : f32
    %285 = vector.broadcast %cst_135 : f32 to vector<8x10xf32>
    %286 = arith.mulf %284, %285 : vector<8x10xf32>
    %cst_136 = arith.constant dense<0xFF800000> : vector<8xf32>
    %287 = vector.multi_reduction <maximumf>, %286, %cst_136 [1] : vector<8x10xf32> to vector<8xf32>
    %288 = vector.shape_cast %287 : vector<8xf32> to vector<8x1xf32>
    %cst_137 = arith.constant 0xFF800000 : f32
    %289 = vector.broadcast %cst_137 : f32 to vector<8x1xf32>
    %290 = arith.cmpf oeq, %288, %289 : vector<8x1xf32>
    %cst_138 = arith.constant 0.000000e+00 : f32
    %291 = vector.broadcast %cst_138 : f32 to vector<8x1xf32>
    %292 = arith.select %290, %291, %288 : vector<8x1xi1>, vector<8x1xf32>
    %293 = vector.broadcast %292 : vector<8x1xf32> to vector<8x10xf32>
    %294 = arith.subf %286, %293 : vector<8x10xf32>
    %295 = math.exp %294 : vector<8x10xf32>
    %cst_139 = arith.constant dense<0.000000e+00> : vector<8xf32>
    %296 = vector.multi_reduction <add>, %295, %cst_139 [1] : vector<8x10xf32> to vector<8xf32>
    %297 = vector.shape_cast %296 : vector<8xf32> to vector<8x1xf32>
    %cst_140 = arith.constant 0.000000e+00 : f32
    %298 = vector.broadcast %cst_140 : f32 to vector<8x1xf32>
    %299 = arith.cmpf oeq, %297, %298 : vector<8x1xf32>
    %cst_141 = arith.constant 1.000000e+00 : f32
    %300 = vector.broadcast %cst_141 : f32 to vector<8x1xf32>
    %301 = arith.select %299, %300, %297 : vector<8x1xi1>, vector<8x1xf32>
    %302 = tpu.reciprocal %301 {approx = true} : vector<8x1xf32> -> vector<8x1xf32>
    %303 = vector.broadcast %302 : vector<8x1xf32> to vector<8x10xf32>
    %304 = arith.mulf %295, %303 : vector<8x10xf32>
    %305 = arith.truncf %304 : vector<8x10xf32> to vector<8x10xbf16>
    %306 = vector.extract_strided_slice %219 {offsets = [0, 16], sizes = [10, 8], strides = [1, 1]} : vector<10x32xf32> to vector<10x8xf32>
    %307 = arith.truncf %306 : vector<10x8xf32> to vector<10x8xbf16>
    %cst_142 = arith.constant dense<0.000000e+00> : vector<8x8xf32>
    %308 = tpu.matmul %305, %307, %cst_142 {dimension_numbers = #tpu.dot_dimension_numbers<[1], [0], [0], [1], [0, 0, 1, 1], [], []>} : vector<8x10xbf16>, vector<10x8xbf16>, vector<8x8xf32> -> vector<8x8xf32>
    %c0_143 = arith.constant 0 : index
    %c16_144 = arith.constant 16 : index
    %309 = vector.load %arg33[%c0_143, %c16_144] : memref<8x32xf32, #tpu.memory_space<vmem>>, vector<8x8xf32>
    tpu.vector_store %arg33[%c0_143, %c16_144], %308 {strides = array<i32>} : memref<8x32xf32, #tpu.memory_space<vmem>>, vector<8x8xf32>,
    %310 = vector.extract_strided_slice %205 {offsets = [0, 24], sizes = [8, 8], strides = [1, 1]} : vector<8x32xf32> to vector<8x8xf32>
    %311 = arith.truncf %310 : vector<8x8xf32> to vector<8x8xbf16>
    %312 = vector.extract_strided_slice %212 {offsets = [0, 24], sizes = [10, 8], strides = [1, 1]} : vector<10x32xf32> to vector<10x8xf32>
    %313 = arith.truncf %312 : vector<10x8xf32> to vector<10x8xbf16>
    %cst_145 = arith.constant dense<0.000000e+00> : vector<8x10xf32>
    %314 = tpu.matmul %311, %313, %cst_145 {dimension_numbers = #tpu.dot_dimension_numbers<[1], [1], [0], [0], [0, 0, 1, 0], [], []>} : vector<8x8xbf16>, vector<10x8xbf16>, vector<8x10xf32> -> vector<8x10xf32>
    %cst_146 = arith.constant 0.353553385 : f32
    %315 = vector.broadcast %cst_146 : f32 to vector<8x10xf32>
    %316 = arith.mulf %314, %315 : vector<8x10xf32>
    %cst_147 = arith.constant dense<0xFF800000> : vector<8xf32>
    %317 = vector.multi_reduction <maximumf>, %316, %cst_147 [1] : vector<8x10xf32> to vector<8xf32>
    %318 = vector.shape_cast %317 : vector<8xf32> to vector<8x1xf32>
    %cst_148 = arith.constant 0xFF800000 : f32
    %319 = vector.broadcast %cst_148 : f32 to vector<8x1xf32>
    %320 = arith.cmpf oeq, %318, %319 : vector<8x1xf32>
    %cst_149 = arith.constant 0.000000e+00 : f32
    %321 = vector.broadcast %cst_149 : f32 to vector<8x1xf32>
    %322 = arith.select %320, %321, %318 : vector<8x1xi1>, vector<8x1xf32>
    %323 = vector.broadcast %322 : vector<8x1xf32> to vector<8x10xf32>
    %324 = arith.subf %316, %323 : vector<8x10xf32>
    %325 = math.exp %324 : vector<8x10xf32>
    %cst_150 = arith.constant dense<0.000000e+00> : vector<8xf32>
    %326 = vector.multi_reduction <add>, %325, %cst_150 [1] : vector<8x10xf32> to vector<8xf32>
    %327 = vector.shape_cast %326 : vector<8xf32> to vector<8x1xf32>
    %cst_151 = arith.constant 0.000000e+00 : f32
    %328 = vector.broadcast %cst_151 : f32 to vector<8x1xf32>
    %329 = arith.cmpf oeq, %327, %328 : vector<8x1xf32>
    %cst_152 = arith.constant 1.000000e+00 : f32
    %330 = vector.broadcast %cst_152 : f32 to vector<8x1xf32>
    %331 = arith.select %329, %330, %327 : vector<8x1xi1>, vector<8x1xf32>
    %332 = tpu.reciprocal %331 {approx = true} : vector<8x1xf32> -> vector<8x1xf32>
    %333 = vector.broadcast %332 : vector<8x1xf32> to vector<8x10xf32>
    %334 = arith.mulf %325, %333 : vector<8x10xf32>
    %335 = arith.truncf %334 : vector<8x10xf32> to vector<8x10xbf16>
    %336 = vector.extract_strided_slice %219 {offsets = [0, 24], sizes = [10, 8], strides = [1, 1]} : vector<10x32xf32> to vector<10x8xf32>
    %337 = arith.truncf %336 : vector<10x8xf32> to vector<10x8xbf16>
    %cst_153 = arith.constant dense<0.000000e+00> : vector<8x8xf32>
    %338 = tpu.matmul %335, %337, %cst_153 {dimension_numbers = #tpu.dot_dimension_numbers<[1], [0], [0], [1], [0, 0, 1, 1], [], []>} : vector<8x10xbf16>, vector<10x8xbf16>, vector<8x8xf32> -> vector<8x8xf32>
    %c0_154 = arith.constant 0 : index
    %c24_155 = arith.constant 24 : index
    %339 = vector.load %arg33[%c0_154, %c24_155] : memref<8x32xf32, #tpu.memory_space<vmem>>, vector<8x8xf32>
    tpu.vector_store %arg33[%c0_154, %c24_155], %338 {strides = array<i32>} : memref<8x32xf32, #tpu.memory_space<vmem>>, vector<8x8xf32>,
    %c0_156 = arith.constant 0 : index
    %c0_157 = arith.constant 0 : index
    %340 = vector.load %arg33[%c0_156, %c0_157] : memref<8x32xf32, #tpu.memory_space<vmem>>, vector<8x32xf32>
    %341 = arith.truncf %340 : vector<8x32xf32> to vector<8x32xbf16>
    %c0_158 = arith.constant 0 : index
    %c0_159 = arith.constant 0 : index
    %c0_160 = arith.constant 0 : index
    %342 = vector.load %arg21[%c0_158, %c0_159, %c0_160] : memref<1x32x32xbf16, #tpu.memory_space<vmem>>, vector<1x32x32xbf16>
    %343 = vector.shape_cast %342 : vector<1x32x32xbf16> to vector<32x32xbf16>
    %cst_161 = arith.constant dense<0.000000e+00> : vector<8x32xf32>
    %344 = tpu.matmul %341, %343, %cst_161 {dimension_numbers = #tpu.dot_dimension_numbers<[1], [0], [0], [1], [0, 0, 1, 1], [], []>} : vector<8x32xbf16>, vector<32x32xbf16>, vector<8x32xf32> -> vector<8x32xf32>
    %c0_162 = arith.constant 0 : index
    %c0_163 = arith.constant 0 : index
    %c0_164 = arith.constant 0 : index
    %345 = vector.load %arg22[%c0_162, %c0_163, %c0_164] : memref<1x1x32xf32, #tpu.memory_space<vmem>>, vector<1x1x32xf32>
    %346 = vector.shape_cast %345 : vector<1x1x32xf32> to vector<1x32xf32>
    %347 = vector.broadcast %346 : vector<1x32xf32> to vector<8x32xf32>
    %348 = arith.addf %344, %347 : vector<8x32xf32>
    %349 = arith.addf %195, %348 : vector<8x32xf32>
    %cst_165 = arith.constant dense<0.000000e+00> : vector<8xf32>
    %350 = vector.multi_reduction <add>, %349, %cst_165 [1] : vector<8x32xf32> to vector<8xf32>
    %351 = vector.shape_cast %350 : vector<8xf32> to vector<8x1xf32>
    %cst_166 = arith.constant 3.200000e+01 : f32
    %352 = vector.broadcast %cst_166 : f32 to vector<8x1xf32>
    %353 = arith.divf %351, %352 : vector<8x1xf32>
    %354 = vector.broadcast %353 : vector<8x1xf32> to vector<8x32xf32>
    %355 = arith.subf %349, %354 : vector<8x32xf32>
    %356 = arith.mulf %355, %355 : vector<8x32xf32>
    %cst_167 = arith.constant dense<0.000000e+00> : vector<8xf32>
    %357 = vector.multi_reduction <add>, %356, %cst_167 [1] : vector<8x32xf32> to vector<8xf32>
    %358 = vector.shape_cast %357 : vector<8xf32> to vector<8x1xf32>
    %cst_168 = arith.constant 3.200000e+01 : f32
    %359 = vector.broadcast %cst_168 : f32 to vector<8x1xf32>
    %360 = arith.divf %358, %359 : vector<8x1xf32>
    %361 = vector.broadcast %353 : vector<8x1xf32> to vector<8x32xf32>
    %362 = arith.subf %349, %361 : vector<8x32xf32>
    %cst_169 = arith.constant 9.99999974E-6 : f32
    %363 = vector.broadcast %cst_169 : f32 to vector<8x1xf32>
    %364 = arith.addf %360, %363 : vector<8x1xf32>
    %365 = math.rsqrt %364 : vector<8x1xf32>
    %366 = vector.broadcast %365 : vector<8x1xf32> to vector<8x32xf32>
    %367 = arith.mulf %362, %366 : vector<8x32xf32>
    %c0_170 = arith.constant 0 : index
    %c0_171 = arith.constant 0 : index
    %c0_172 = arith.constant 0 : index
    %368 = vector.load %arg23[%c0_170, %c0_171, %c0_172] : memref<1x1x32xf32, #tpu.memory_space<vmem>>, vector<1x1x32xf32>
    %369 = vector.shape_cast %368 : vector<1x1x32xf32> to vector<1x32xf32>
    %370 = vector.broadcast %369 : vector<1x32xf32> to vector<8x32xf32>
    %371 = arith.mulf %367, %370 : vector<8x32xf32>
    %c0_173 = arith.constant 0 : index
    %c0_174 = arith.constant 0 : index
    %c0_175 = arith.constant 0 : index
    %372 = vector.load %arg24[%c0_173, %c0_174, %c0_175] : memref<1x1x32xf32, #tpu.memory_space<vmem>>, vector<1x1x32xf32>
    %373 = vector.shape_cast %372 : vector<1x1x32xf32> to vector<1x32xf32>
    %374 = vector.broadcast %373 : vector<1x32xf32> to vector<8x32xf32>
    %375 = arith.addf %371, %374 : vector<8x32xf32>
    %376 = arith.truncf %375 : vector<8x32xf32> to vector<8x32xbf16>
    %c0_176 = arith.constant 0 : index
    %c0_177 = arith.constant 0 : index
    %c0_178 = arith.constant 0 : index
    %377 = vector.load %arg25[%c0_176, %c0_177, %c0_178] : memref<1x32x64xbf16, #tpu.memory_space<vmem>>, vector<1x32x64xbf16>
    %378 = vector.shape_cast %377 : vector<1x32x64xbf16> to vector<32x64xbf16>
    %cst_179 = arith.constant dense<0.000000e+00> : vector<8x64xf32>
    %379 = tpu.matmul %376, %378, %cst_179 {dimension_numbers = #tpu.dot_dimension_numbers<[1], [0], [0], [1], [0, 0, 1, 1], [], []>} : vector<8x32xbf16>, vector<32x64xbf16>, vector<8x64xf32> -> vector<8x64xf32>
    %c0_180 = arith.constant 0 : index
    %c0_181 = arith.constant 0 : index
    %c0_182 = arith.constant 0 : index
    %380 = vector.load %arg26[%c0_180, %c0_181, %c0_182] : memref<1x1x64xf32, #tpu.memory_space<vmem>>, vector<1x1x64xf32>
    %381 = vector.shape_cast %380 : vector<1x1x64xf32> to vector<1x64xf32>
    %382 = vector.broadcast %381 : vector<1x64xf32> to vector<8x64xf32>
    %383 = arith.addf %379, %382 : vector<8x64xf32>
    %cst_183 = arith.constant 0.000000e+00 : f32
    %384 = vector.broadcast %cst_183 : f32 to vector<8x64xf32>
    %385 = arith.maximumf %383, %384 : vector<8x64xf32>
    %386 = arith.truncf %385 : vector<8x64xf32> to vector<8x64xbf16>
    %c0_184 = arith.constant 0 : index
    %c0_185 = arith.constant 0 : index
    %c0_186 = arith.constant 0 : index
    %387 = vector.load %arg27[%c0_184, %c0_185, %c0_186] : memref<1x64x32xbf16, #tpu.memory_space<vmem>>, vector<1x64x32xbf16>
    %388 = vector.shape_cast %387 : vector<1x64x32xbf16> to vector<64x32xbf16>
    %cst_187 = arith.constant dense<0.000000e+00> : vector<8x32xf32>
    %389 = tpu.matmul %386, %388, %cst_187 {dimension_numbers = #tpu.dot_dimension_numbers<[1], [0], [0], [1], [0, 0, 1, 1], [], []>} : vector<8x64xbf16>, vector<64x32xbf16>, vector<8x32xf32> -> vector<8x32xf32>
    %c0_188 = arith.constant 0 : index
    %c0_189 = arith.constant 0 : index
    %c0_190 = arith.constant 0 : index
    %390 = vector.load %arg28[%c0_188, %c0_189, %c0_190] : memref<1x1x32xf32, #tpu.memory_space<vmem>>, vector<1x1x32xf32>
    %391 = vector.shape_cast %390 : vector<1x1x32xf32> to vector<1x32xf32>
    %392 = vector.broadcast %391 : vector<1x32xf32> to vector<8x32xf32>
    %393 = arith.addf %389, %392 : vector<8x32xf32>
    %394 = arith.addf %375, %393 : vector<8x32xf32>
    %cst_191 = arith.constant dense<0.000000e+00> : vector<8xf32>
    %395 = vector.multi_reduction <add>, %394, %cst_191 [1] : vector<8x32xf32> to vector<8xf32>
    %396 = vector.shape_cast %395 : vector<8xf32> to vector<8x1xf32>
    %cst_192 = arith.constant 3.200000e+01 : f32
    %397 = vector.broadcast %cst_192 : f32 to vector<8x1xf32>
    %398 = arith.divf %396, %397 : vector<8x1xf32>
    %399 = vector.broadcast %398 : vector<8x1xf32> to vector<8x32xf32>
    %400 = arith.subf %394, %399 : vector<8x32xf32>
    %401 = arith.mulf %400, %400 : vector<8x32xf32>
    %cst_193 = arith.constant dense<0.000000e+00> : vector<8xf32>
    %402 = vector.multi_reduction <add>, %401, %cst_193 [1] : vector<8x32xf32> to vector<8xf32>
    %403 = vector.shape_cast %402 : vector<8xf32> to vector<8x1xf32>
    %cst_194 = arith.constant 3.200000e+01 : f32
    %404 = vector.broadcast %cst_194 : f32 to vector<8x1xf32>
    %405 = arith.divf %403, %404 : vector<8x1xf32>
    %406 = vector.broadcast %398 : vector<8x1xf32> to vector<8x32xf32>
    %407 = arith.subf %394, %406 : vector<8x32xf32>
    %cst_195 = arith.constant 9.99999974E-6 : f32
    %408 = vector.broadcast %cst_195 : f32 to vector<8x1xf32>
    %409 = arith.addf %405, %408 : vector<8x1xf32>
    %410 = math.rsqrt %409 : vector<8x1xf32>
    %411 = vector.broadcast %410 : vector<8x1xf32> to vector<8x32xf32>
    %412 = arith.mulf %407, %411 : vector<8x32xf32>
    %c0_196 = arith.constant 0 : index
    %c0_197 = arith.constant 0 : index
    %c0_198 = arith.constant 0 : index
    %413 = vector.load %arg29[%c0_196, %c0_197, %c0_198] : memref<1x1x32xf32, #tpu.memory_space<vmem>>, vector<1x1x32xf32>
    %414 = vector.shape_cast %413 : vector<1x1x32xf32> to vector<1x32xf32>
    %415 = vector.broadcast %414 : vector<1x32xf32> to vector<8x32xf32>
    %416 = arith.mulf %412, %415 : vector<8x32xf32>
    %c0_199 = arith.constant 0 : index
    %c0_200 = arith.constant 0 : index
    %c0_201 = arith.constant 0 : index
    %417 = vector.load %arg30[%c0_199, %c0_200, %c0_201] : memref<1x1x32xf32, #tpu.memory_space<vmem>>, vector<1x1x32xf32>
    %418 = vector.shape_cast %417 : vector<1x1x32xf32> to vector<1x32xf32>
    %419 = vector.broadcast %418 : vector<1x32xf32> to vector<8x32xf32>
    %420 = arith.addf %416, %419 : vector<8x32xf32>
    %c0_202 = arith.constant 0 : index
    %c0_203 = arith.constant 0 : index
    %421 = vector.load %arg32[%c0_202, %c0_203] : memref<8x32xf32, #tpu.memory_space<vmem>>, vector<8x32xf32>
    tpu.vector_store %arg32[%c0_202, %c0_203], %420 {strides = array<i32>} : memref<8x32xf32, #tpu.memory_space<vmem>>, vector<8x32xf32>,
    %c1_i32 = arith.constant 1 : i32
    %422 = arith.cmpi eq, %arg1, %c1_i32 : i32
    %423 = arith.extui %422 : i1 to i32
    %c0_i32_204 = arith.constant 0 : i32
    %424 = arith.cmpi ne, %423, %c0_i32_204 : i32
    scf.if %424 {
      %425 = arith.truncf %420 : vector<8x32xf32> to vector<8x32xbf16>
      %c0_205 = arith.constant 0 : index
      %c0_206 = arith.constant 0 : index
      %c0_207 = arith.constant 0 : index
      %426 = vector.load %arg31[%c0_205, %c0_206, %c0_207] : memref<1x8x32xbf16, #tpu.memory_space<vmem>>, vector<1x8x32xbf16>
      %427 = vector.shape_cast %426 : vector<1x8x32xbf16> to vector<8x32xbf16>
      %428 = vector.shape_cast %425 : vector<8x32xbf16> to vector<1x8x32xbf16>
      tpu.vector_store %arg31[%c0_205, %c0_206, %c0_207], %428 {strides = array<i32>} : memref<1x8x32xbf16, #tpu.memory_space<vmem>>, vector<1x8x32xbf16>,
    } else {
    }
    return
  }
  func.func @transform_0(%arg0: i32, %arg1: i32) -> (i32, i32, i32) {
    %c0_i32 = arith.constant 0 : i32
    %c0_i32_0 = arith.constant 0 : i32
    %c0_i32_1 = arith.constant 0 : i32
    return %arg0, %c0_i32, %c0_i32_0 : i32, i32, i32
  }
  func.func @transform_1(%arg0: i32, %arg1: i32) -> (i32, i32, i32) {
    %c0_i32 = arith.constant 0 : i32
    %c0_i32_0 = arith.constant 0 : i32
    %c0_i32_1 = arith.constant 0 : i32
    return %arg0, %c0_i32, %c0_i32_0 : i32, i32, i32
  }
  func.func @transform_2(%arg0: i32, %arg1: i32) -> (i32, i32, i32) {
    %c0_i32 = arith.constant 0 : i32
    %c0_i32_0 = arith.constant 0 : i32
    %c0_i32_1 = arith.constant 0 : i32
    return %arg0, %c0_i32, %c0_i32_0 : i32, i32, i32
  }
  func.func @transform_3(%arg0: i32, %arg1: i32) -> (i32, i32, i32) {
    %c0_i32 = arith.constant 0 : i32
    %c0_i32_0 = arith.constant 0 : i32
    %c0_i32_1 = arith.constant 0 : i32
    return %arg1, %c0_i32, %c0_i32_0 : i32, i32, i32
  }
  func.func @transform_4(%arg0: i32, %arg1: i32) -> (i32, i32, i32) {
    %c0_i32 = arith.constant 0 : i32
    %c0_i32_0 = arith.constant 0 : i32
    %c0_i32_1 = arith.constant 0 : i32
    return %arg1, %c0_i32, %c0_i32_0 : i32, i32, i32
  }
  func.func @transform_5(%arg0: i32, %arg1: i32) -> (i32, i32, i32) {
    %c0_i32 = arith.constant 0 : i32
    %c0_i32_0 = arith.constant 0 : i32
    %c0_i32_1 = arith.constant 0 : i32
    return %arg1, %c0_i32, %c0_i32_0 : i32, i32, i32
  }
  func.func @transform_6(%arg0: i32, %arg1: i32) -> (i32, i32, i32) {
    %c0_i32 = arith.constant 0 : i32
    %c0_i32_0 = arith.constant 0 : i32
    %c0_i32_1 = arith.constant 0 : i32
    return %arg1, %c0_i32, %c0_i32_0 : i32, i32, i32
  }
  func.func @transform_7(%arg0: i32, %arg1: i32) -> (i32, i32, i32) {
    %c0_i32 = arith.constant 0 : i32
    %c0_i32_0 = arith.constant 0 : i32
    %c0_i32_1 = arith.constant 0 : i32
    return %arg1, %c0_i32, %c0_i32_0 : i32, i32, i32
  }
  func.func @transform_8(%arg0: i32, %arg1: i32) -> (i32, i32, i32) {
    %c0_i32 = arith.constant 0 : i32
    %c0_i32_0 = arith.constant 0 : i32
    %c0_i32_1 = arith.constant 0 : i32
    return %arg1, %c0_i32, %c0_i32_0 : i32, i32, i32
  }
  func.func @transform_9(%arg0: i32, %arg1: i32) -> (i32, i32, i32) {
    %c0_i32 = arith.constant 0 : i32
    %c0_i32_0 = arith.constant 0 : i32
    %c0_i32_1 = arith.constant 0 : i32
    return %arg1, %c0_i32, %c0_i32_0 : i32, i32, i32
  }
  func.func @transform_10(%arg0: i32, %arg1: i32) -> (i32, i32, i32) {
    %c0_i32 = arith.constant 0 : i32
    %c0_i32_0 = arith.constant 0 : i32
    %c0_i32_1 = arith.constant 0 : i32
    return %arg1, %c0_i32, %c0_i32_0 : i32, i32, i32
  }
  func.func @transform_11(%arg0: i32, %arg1: i32) -> (i32, i32, i32) {
    %c0_i32 = arith.constant 0 : i32
    %c0_i32_0 = arith.constant 0 : i32
    %c0_i32_1 = arith.constant 0 : i32
    return %arg1, %c0_i32, %c0_i32_0 : i32, i32, i32
  }
  func.func @transform_12(%arg0: i32, %arg1: i32) -> (i32, i32, i32) {
    %c0_i32 = arith.constant 0 : i32
    %c0_i32_0 = arith.constant 0 : i32
    %c0_i32_1 = arith.constant 0 : i32
    return %arg1, %c0_i32, %c0_i32_0 : i32, i32, i32
  }
  func.func @transform_13(%arg0: i32, %arg1: i32) -> (i32, i32, i32) {
    %c0_i32 = arith.constant 0 : i32
    %c0_i32_0 = arith.constant 0 : i32
    %c0_i32_1 = arith.constant 0 : i32
    return %arg1, %c0_i32, %c0_i32_0 : i32, i32, i32
  }
  func.func @transform_14(%arg0: i32, %arg1: i32) -> (i32, i32, i32) {
    %c0_i32 = arith.constant 0 : i32
    %c0_i32_0 = arith.constant 0 : i32
    %c0_i32_1 = arith.constant 0 : i32
    return %arg1, %c0_i32, %c0_i32_0 : i32, i32, i32
  }
  func.func @transform_15(%arg0: i32, %arg1: i32) -> (i32, i32, i32) {
    %c0_i32 = arith.constant 0 : i32
    %c0_i32_0 = arith.constant 0 : i32
    %c0_i32_1 = arith.constant 0 : i32
    return %arg1, %c0_i32, %c0_i32_0 : i32, i32, i32
  }
  func.func @transform_16(%arg0: i32, %arg1: i32) -> (i32, i32, i32) {
    %c0_i32 = arith.constant 0 : i32
    %c0_i32_0 = arith.constant 0 : i32
    %c0_i32_1 = arith.constant 0 : i32
    return %arg1, %c0_i32, %c0_i32_0 : i32, i32, i32
  }
  func.func @transform_17(%arg0: i32, %arg1: i32) -> (i32, i32, i32) {
    %c0_i32 = arith.constant 0 : i32
    %c0_i32_0 = arith.constant 0 : i32
    %c0_i32_1 = arith.constant 0 : i32
    return %arg1, %c0_i32, %c0_i32_0 : i32, i32, i32
  }
  func.func @transform_18(%arg0: i32, %arg1: i32) -> (i32, i32, i32) {
    %c0_i32 = arith.constant 0 : i32
    %c0_i32_0 = arith.constant 0 : i32
    %c0_i32_1 = arith.constant 0 : i32
    return %arg1, %c0_i32, %c0_i32_0 : i32, i32, i32
  }
  func.func @transform_19(%arg0: i32, %arg1: i32) -> (i32, i32, i32) {
    %c0_i32 = arith.constant 0 : i32
    %c0_i32_0 = arith.constant 0 : i32
    %c0_i32_1 = arith.constant 0 : i32
    return %arg1, %c0_i32, %c0_i32_0 : i32, i32, i32
  }
  func.func @transform_20(%arg0: i32, %arg1: i32) -> (i32, i32, i32) {
    %c0_i32 = arith.constant 0 : i32
    %c0_i32_0 = arith.constant 0 : i32
    %c0_i32_1 = arith.constant 0 : i32
    return %arg1, %c0_i32, %c0_i32_0 : i32, i32, i32
  }
  func.func @transform_21(%arg0: i32, %arg1: i32) -> (i32, i32, i32) {
    %c0_i32 = arith.constant 0 : i32
    %c0_i32_0 = arith.constant 0 : i32
    %c0_i32_1 = arith.constant 0 : i32
    return %arg1, %c0_i32, %c0_i32_0 : i32, i32, i32
  }
  func.func @transform_22(%arg0: i32, %arg1: i32) -> (i32, i32, i32) {
    %c0_i32 = arith.constant 0 : i32
    %c0_i32_0 = arith.constant 0 : i32
    %c0_i32_1 = arith.constant 0 : i32
    return %arg1, %c0_i32, %c0_i32_0 : i32, i32, i32
  }
  func.func @transform_23(%arg0: i32, %arg1: i32) -> (i32, i32, i32) {
    %c0_i32 = arith.constant 0 : i32
    %c0_i32_0 = arith.constant 0 : i32
    %c0_i32_1 = arith.constant 0 : i32
    return %arg1, %c0_i32, %c0_i32_0 : i32, i32, i32
  }
  func.func @transform_24(%arg0: i32, %arg1: i32) -> (i32, i32, i32) {
    %c0_i32 = arith.constant 0 : i32
    %c0_i32_0 = arith.constant 0 : i32
    %c0_i32_1 = arith.constant 0 : i32
    return %arg1, %c0_i32, %c0_i32_0 : i32, i32, i32
  }
  func.func @transform_25(%arg0: i32, %arg1: i32) -> (i32, i32, i32) {
    %c0_i32 = arith.constant 0 : i32
    %c0_i32_0 = arith.constant 0 : i32
    %c0_i32_1 = arith.constant 0 : i32
    return %arg1, %c0_i32, %c0_i32_0 : i32, i32, i32
  }
  func.func @transform_26(%arg0: i32, %arg1: i32) -> (i32, i32, i32) {
    %c0_i32 = arith.constant 0 : i32
    %c0_i32_0 = arith.constant 0 : i32
    %c0_i32_1 = arith.constant 0 : i32
    return %arg1, %c0_i32, %c0_i32_0 : i32, i32, i32
  }
  func.func @transform_27(%arg0: i32, %arg1: i32) -> (i32, i32, i32) {
    %c0_i32 = arith.constant 0 : i32
    %c0_i32_0 = arith.constant 0 : i32
    %c0_i32_1 = arith.constant 0 : i32
    return %arg1, %c0_i32, %c0_i32_0 : i32, i32, i32
  }
  func.func @transform_28(%arg0: i32, %arg1: i32) -> (i32, i32, i32) {
    %c0_i32 = arith.constant 0 : i32
    %c0_i32_0 = arith.constant 0 : i32
    %c0_i32_1 = arith.constant 0 : i32
    return %arg1, %c0_i32, %c0_i32_0 : i32, i32, i32
  }
  func.func @transform_29(%arg0: i32, %arg1: i32) -> (i32, i32, i32) {
    %c0_i32 = arith.constant 0 : i32
    %c0_i32_0 = arith.constant 0 : i32
    %c0_i32_1 = arith.constant 0 : i32
    return %arg0, %c0_i32, %c0_i32_0 : i32, i32, i32
  }
}

</mosaic_0001>

<bundles_post_ra>
// kernel: trans_decoder_forward.3
= control target key start
LH: loop header
LB: loop body
LE: loop exit
PB: predicated region body
PF: predicated region fallthrough
CT: control target
= control target key end

     0   :  { %vm20_vm0 = vcmask 130048   ;;  %v149_v1 = vmov 0.0   ;;  %s194_s0 = inlined_call_operand.vmem [shape: bf16[16,32], index: 0, kind: input, shape index: {}]   ;;  %s195_s1 = inlined_call_operand.vmem [shape: bf16[32,16], index: 1, kind: input, shape index: {}]   ;;  %s196_s2 = inlined_call_operand.vmem [shape: f32[1,16], index: 2, kind: input, shape index: {}]   ;;  %s197_s3 = inlined_call_operand.hbm [shape: f32[16,16], index: 3, kind: output, shape index: {}]  }
   0x1   :  { %v117_v0 = vld [vmem:[%s195_s1 + $0x8] sm:$0xff]  ;;  %21 = vst.msk [vmem:[#allocation2] sm:$0xff] %vm20_vm0, %v149_v1 }
   0x2   :  { %8 = vsyncpa [#allocation4], 0  ;;  %58 = vmatpush.bf16.msra.mxu0 %v117_v0  ;;  %v116_v2 = vld [vmem:[%s195_s1] sm:$0xff]  ;;  %22 = vst.msk [vmem:[#allocation2 + $0x8] sm:$0xff] %vm20_vm0, %v149_v1  ;;  %vm48_vm1 = vcmask 261120   ;;  %s90_s22 = sshll.u32 %s197_s3, 4  ;;  %s91_s22 = int_to_ptr.hbm [resolvable:$true] %s90_s22 }
   0x3   :  { %v115_v3 = vld [vmem:[%s194_s0] sm:$0xff]  ;;  %s150_s0 = smov [#allocation3]   ;;  %s152_s23 = smov 8  }
   0x4   :  { %v122_v8 = vld [vmem:[%s196_s2] ss:$0 sm:$0xff]  ;;  %s88_s1 = sshll.u32 %s150_s0, 4  ;;  %s151_s2 = smov 128   ;;  %s89_s1 = int_to_ptr.vmem [resolvable:$true] %s88_s1 }
   0x6   :  { %59 = vmatpush.bf16.msra.mxu0 %v116_v2 }
   0x8   :  { %v23_v4 = vld [vmem:[#allocation2] sm:$0xff] }
   0x9   :  { %114 = vmatmul.msk.bf16.vlgmr.msra.gmra.mxu0 %vm48_vm1, %v115_v3  ;;  %v24_v7 = vld [vmem:[#allocation2 + $0x8] sm:$0xff] }
  0x86   :  { %v61_v5 = vpop.f32.mrf.mxu0 }
  0x87   :  { %v66_v6 = vadd.f32 %v61_v5, %v23_v4 }
  0x89   :  { %69 = vst.msk [vmem:[#allocation2] sm:$0xff] %vm20_vm0, %v66_v6 }
  0x8e   :  { %v63_v9 = vpop.f32.mrf.mxu0 }
  0x8f   :  { %v67_v10 = vadd.f32 %v63_v9, %v24_v7 }
  0x90   :  { %v74_v11 = vld [vmem:[#allocation2] sm:$0xff] }
  0x91   :  { %70 = vst.msk [vmem:[#allocation2 + $0x8] sm:$0xff] %vm20_vm0, %v67_v10  ;;  %v80_v12 = vadd.f32 %v122_v8, %v74_v11 }
  0x93   :  { %82 = vst.msk [vmem:[#allocation3] sm:$0xff] %vm20_vm0, %v80_v12 }
  0x98   :  { %v75_v13 = vld [vmem:[#allocation2 + $0x8] sm:$0xff] }
  0x99   :  { %v81_v14 = vadd.f32 %v122_v8, %v75_v13 }
  0x9b   :  { %83 = vst.msk [vmem:[#allocation3 + $0x8] sm:$0xff] %vm20_vm0, %v81_v14 }
  0x9c   :  { %96 = dma.vmem_to_hbm [thread:$0]  %s89_s1, 256, %s91_s22, [#allocation4], %s151_s2, %s151_s2, %s152_s23  }
  0x9d   :  { %147 = dma.done.wait [#allocation4], 256  }
  0x9e   :  { %148 = vsyncadd [#allocation4], 4294967040 }
  0x9f   :  { %101 = vsyncpa [#allocation4], 1 }

// kernel: trans_decoder_forward.2
= control target key start
LH: loop header
LB: loop body
LE: loop exit
PB: predicated region body
PF: predicated region fallthrough
CT: control target
= control target key end

     0   :  { %s3157_s6 = smov 1   ;;  %s3158_s10 = smov 2   ;;  %s3676_s0 = inlined_call_operand.smem [shape: u32[30], index: -1, kind: input, shape index: {}] }
   0x1   :  { %s3202_s5 = sld [smem:[%s3676_s0]]   ;;  %s3159_s14 = smov 3  }
   0x2   :  { %s3207_s9 = sld [smem:[%s3676_s0 + %s3157_s6]]   ;;  %s3160_s18 = smov 4  }
   0x3   :  { %s3212_s13 = sld [smem:[%s3676_s0 + %s3158_s10]]   ;;  %s3161_s22 = smov 5  }
   0x4   :  { %s3217_s17 = sld [smem:[%s3676_s0 + %s3159_s14]]   ;;  %s3162_s26 = smov 6  }
   0x5   :  { %s3222_s21 = sld [smem:[%s3676_s0 + %s3160_s18]]   ;;  %s3163_s30 = smov 7  }
   0x6   :  { %s3227_s25 = sld [smem:[%s3676_s0 + %s3161_s22]]   ;;  %s3164_s4 = smov 8  }
   0x7   :  { %3690 = sst [smem:[#allocation4_spill]] %s3202_s5  ;;  %s3165_s10 = smov 9  }
   0x8   :  { %3691 = sst [smem:[#allocation5_spill]] %s3207_s9  ;;  %s3166_s15 = smov 10  }
   0x9   :  { %3692 = sst [smem:[#allocation6_spill]] %s3212_s13  ;;  %s3167_s20 = smov 11  }
   0xa   :  { %3693 = sst [smem:[#allocation7_spill]] %s3217_s17  ;;  %s3169_s1 = smov 13  }
   0xb   :  { %3694 = sst [smem:[#allocation8_spill]] %s3222_s21  ;;  %s3170_s7 = smov 14  }
   0xc   :  { %3695 = sst [smem:[#allocation9_spill]] %s3227_s25  ;;  %s3172_s22 = smov 16  }
   0xd   :  { %s3232_s29 = sld [smem:[%s3676_s0 + %s3162_s26]]   ;;  %s3168_s26 = smov 12  }
   0xe   :  { %s3237_s3 = sld [smem:[%s3676_s0 + %s3163_s30]]   ;;  %s3173_s28 = smov 17  }
   0xf   :  { %s3242_s8 = sld [smem:[%s3676_s0 + %s3164_s4]]   ;;  %s3353_s11 = smov 0  }
  0x10   :  { %s3247_s14 = sld [smem:[%s3676_s0 + %s3165_s10]]   ;;  %s3351_s10 = smov 0  }
  0x11   :  { %s3252_s19 = sld [smem:[%s3676_s0 + %s3166_s15]]   ;;  %s3171_s15 = smov 15  }
  0x12   :  { %s3257_s24 = sld [smem:[%s3676_s0 + %s3167_s20]]   ;;  %s3357_s16 = smov 0  }
  0x13   :  { %3696 = sst [smem:[#allocation10_spill]] %s3232_s29 }
  0x14   :  { %3697 = sst [smem:[#allocation11_spill]] %s3237_s3 }
  0x15   :  { %3698 = sst [smem:[#allocation12_spill]] %s3242_s8 }
  0x16   :  { %3699 = sst [smem:[#allocation13_spill]] %s3247_s14 }
  0x17   :  { %3700 = sst [smem:[#allocation14_spill]] %s3252_s19 }
  0x18   :  { %3701 = sst [smem:[#allocation15_spill]] %s3257_s24 }
  0x19   :  { %s3262_s30 = sld [smem:[%s3676_s0 + %s3168_s26]]  }
  0x1a   :  { %s3267_s6 = sld [smem:[%s3676_s0 + %s3169_s1]]  }
  0x1b   :  { %s3272_s12 = sld [smem:[%s3676_s0 + %s3170_s7]]   ;;  %s3174_s7 = smov 18  }
  0x1c   :  { %s3277_s20 = sld [smem:[%s3676_s0 + %s3171_s15]]   ;;  %s3175_s15 = smov 19  }
  0x1d   :  { %s3282_s27 = sld [smem:[%s3676_s0 + %s3172_s22]]   ;;  %s3176_s22 = smov 20  }
  0x1e   :  { %s3287_s4 = sld [smem:[%s3676_s0 + %s3173_s28]]   ;;  %s3177_s28 = smov 21  }
  0x1f   :  { %3702 = sst [smem:[#allocation16_spill]] %s3262_s30 }
  0x20   :  { %3703 = sst [smem:[#allocation17_spill]] %s3267_s6 }
  0x21   :  { %3704 = sst [smem:[#allocation18_spill]] %s3272_s12 }
  0x22   :  { %3705 = sst [smem:[#allocation19_spill]] %s3277_s20 }
  0x23   :  { %3706 = sst [smem:[#allocation20_spill]] %s3282_s27 }
  0x24   :  { %3707 = sst [smem:[#allocation21_spill]] %s3287_s4 }
  0x25   :  { %s3292_s12 = sld [smem:[%s3676_s0 + %s3174_s7]]   ;;  %s3178_s7 = smov 22  }
  0x26   :  { %s3297_s20 = sld [smem:[%s3676_s0 + %s3175_s15]]   ;;  %s3179_s15 = smov 23  }
  0x27   :  { %s3302_s27 = sld [smem:[%s3676_s0 + %s3176_s22]]   ;;  %s3180_s22 = smov 24  }
  0x28   :  { %s3307_s4 = sld [smem:[%s3676_s0 + %s3177_s28]]   ;;  %s3181_s28 = smov 25  }
  0x2b   :  { %3708 = sst [smem:[#allocation22_spill]] %s3292_s12 }
  0x2c   :  { %3709 = sst [smem:[#allocation23_spill]] %s3297_s20 }
  0x2d   :  { %3710 = sst [smem:[#allocation24_spill]] %s3302_s27 }
  0x2e   :  { %3711 = sst [smem:[#allocation25_spill]] %s3307_s4 }
  0x2f   :  { %s3312_s12 = sld [smem:[%s3676_s0 + %s3178_s7]]   ;;  %s3182_s7 = smov 26  }
  0x30   :  { %s3317_s20 = sld [smem:[%s3676_s0 + %s3179_s15]]   ;;  %s3183_s15 = smov 27  }
  0x31   :  { %s3322_s27 = sld [smem:[%s3676_s0 + %s3180_s22]]   ;;  %s3184_s22 = smov 28  }
  0x32   :  { %s3327_s4 = sld [smem:[%s3676_s0 + %s3181_s28]]   ;;  %s3185_s28 = smov 29  }
  0x35   :  { %3712 = sst [smem:[#allocation26_spill]] %s3312_s12 }
  0x36   :  { %3713 = sst [smem:[#allocation27_spill]] %s3317_s20 }
  0x37   :  { %3714 = sst [smem:[#allocation28_spill]] %s3322_s27 }
  0x38   :  { %3715 = sst [smem:[#allocation29_spill]] %s3327_s4 }
  0x39   :  { %s3332_s12 = sld [smem:[%s3676_s0 + %s3182_s7]]   ;;  %s3349_s7 = smov 0  }
  0x3a   :  { %s3337_s20 = sld [smem:[%s3676_s0 + %s3183_s15]]   ;;  %s3355_s15 = smov 0  }
  0x3b   :  { %s3342_s27 = sld [smem:[%s3676_s0 + %s3184_s22]]  }
  0x3c   :  { %s3347_s4 = sld [smem:[%s3676_s0 + %s3185_s28]]  }
  0x3f   :  { %3716 = sst [smem:[#allocation30_spill]] %s3332_s12 }
  0x40   :  { %3717 = sst [smem:[#allocation31_spill]] %s3337_s20 }
  0x41   :  { %3718 = sst [smem:[#allocation32_spill]] %s3342_s27 }
  0x42   :  { %3719 = sst [smem:[#allocation33_spill]] %s3347_s4 }
  0x43 LB: > { %3720 = sst [smem:[#allocation34_spill]] %s3139_s7  ;;  %s78_s0 = sadd.s32 1, %s3147_s11  ;;  %s3155_s16 = sphi %s3357_s16, %s69_s16   ;;  %s3151_s15 = sphi %s3355_s15, %s3808_s15   ;;  %s3147_s11 = sphi %s3353_s11, %s3807_s11   ;;  %s3143_s10 = sphi %s3351_s10, %s3806_s10   ;;  %s3139_s7 = sphi %s3349_s7, %s3805_s7  }
  0x44   : > { %3721 = sst [smem:[#allocation35_spill]] %s3147_s11  ;;  %s81_s18 = sadd.s32 1, %s3151_s15 }
  0x45   : > { %3722 = sst [smem:[#allocation36_spill]] %s3151_s15  ;;  %p79_p0 = scmp.ge.s32.totalorder %s78_s0, 2 }
  0x46   : > { %3723 = sst [smem:[#allocation37_spill]] %s3155_s16  ;;  %p2802_p1 = scmp.ge.s32.totalorder %s3155_s16, 1 }
  0x47   : > { %p1074_p2 = scmp.lt.s32.totalorder %s3155_s16, 5  ;;  %s3810_s0 = smov (%p79_p0, %s78_s0), 0 }
  0x48   : > { %3724 = sst [smem:[#allocation38_spill]] %s3810_s0  ;;  %s3812_s18 = smov (!%p79_p0, %s81_s18), %s3151_s15 }
  0x49   : > { %p1075_p3 = pnand %p2802_p1, %p1074_p2  ;;  %p83_p4 = scmp.ge.s32.totalorder %s3812_s18, 2 }
  0x4b   : > { %s3814_s18 = smov (%p83_p4, %s3812_s18), 0  ;;  %1078 = sbr.rel (%p1075_p3) target bundleno = 3318 (0xcf6), region = 136 }
  0x4c   : > { %3725 = sst [smem:[#allocation39_spill]] %s3814_s18 }
  0x50   : > { %p1254_p5 = scmp.lt.s32.totalorder %s3143_s10, 1  ;;  %s3727_s9 = sld [smem:[#allocation5_spill]] }
  0x51   : > { %s3728_s13 = sld [smem:[#allocation6_spill]]  ;;  %p1266_p6 = scmp.lt.s32.totalorder %s3139_s7, 1 }
  0x52   : > { %s3730_s17 = sld [smem:[#allocation7_spill]]  ;;  %s3816_s10 = smov (!%p1254_p5, %s3143_s10), 1 }
  0x53   : > { %s3731_s21 = sld [smem:[#allocation8_spill]]  ;;  %s2803_s28 = sshll.u32 %s3816_s10, 3 }
  0x54   : > { %s3732_s25 = sld [smem:[#allocation9_spill]] }
  0x55   : > { %s3735_s14 = sld [smem:[#allocation13_spill]] }
  0x56   : > { %3738 = sst [smem:[#allocation40_spill]] %s3816_s10  ;;  %s3391_s2 = scalar_lea.vmem %s3727_s9, %s2803_s28 }
  0x57   : > { %s3385_s22 = scalar_select %p1266_p6, %s3139_s7, 1 }
  0x58   : > { %s3740_s6 = sld [smem:[#allocation17_spill]]  ;;  %s3394_s0 = scalar_lea.vmem %s3728_s13, %s2803_s28 }
  0x59   : > { %s3741_s26 = sld [smem:[#allocation18_spill]]  ;;  %s2950_s11 = sshll.u32 %s3385_s22, 4 }
  0x5a   : > { %s3742_s1 = sld [smem:[#allocation19_spill]]  ;;  %s3400_s27 = scalar_lea.vmem %s3730_s17, %s2950_s11 }
  0x5b   : > { %3743 = sst [smem:[#allocation41_spill]] %s3391_s2  ;;  %s3403_s5 = scalar_lea.vmem %s3731_s21, %s2950_s11 }
  0x5c   : > { %3745 = sst [smem:[#allocation42_spill]] %s3394_s0  ;;  %s3406_s2 = scalar_lea.vmem %s3732_s25, %s2950_s11 }
  0x5d   : > { %s3747_s16 = sld [smem:[#allocation22_spill]]  ;;  %s3413_s12 = scalar_lea.vmem %s3735_s14, %s2950_s11 }
  0x5e   : > { %s3748_s4 = sld [smem:[#allocation23_spill]]  ;;  %s3422_s25 = scalar_lea.vmem %s3740_s6, %s2950_s11 }
  0x5f   : > { %3749 = sst [smem:[#allocation43_spill]] %s3400_s27  ;;  %s3425_s13 = scalar_lea.vmem %s3741_s26, %s2950_s11 }
  0x60   : > { %s3750_s23 = sld [smem:[#allocation24_spill]]  ;;  %s3428_s8 = scalar_lea.vmem %s3742_s1, %s2950_s11 }
  0x61   : > { %3751 = sst [smem:[#allocation44_spill]] %s3403_s5 }
  0x62   : > { %s3752_s9 = sld [smem:[#allocation25_spill]] }
  0x63   : > { %3753 = sst [smem:[#allocation45_spill]] %s3406_s2  ;;  %s1327_s7 = scalar_lea.vmem %s3747_s16, %s3385_s22 }
  0x64   : > { %s3754_s28 = sld [smem:[#allocation26_spill]]  ;;  %s3437_s19 = scalar_lea.vmem %s3748_s4, %s2950_s11 }
  0x65   : > { %s3755_s0 = sld [smem:[#allocation27_spill]] }
  0x66   : > { %s3756_s20 = sld [smem:[#allocation28_spill]]  ;;  %s1335_s29 = scalar_lea.vmem %s3750_s23, %s3385_s22 }
  0x67   : > { %3757 = sst [smem:[#allocation46_spill]] %s3413_s12  ;;  %s2826_s12 = sshll.u32 %s3816_s10, 2 }
  0x68   : > { %s3758_s17 = sld [smem:[#allocation29_spill]]  ;;  %s1338_s24 = scalar_lea.vmem %s3752_s9, %s3385_s22 }
  0x69   : > { %s3759_s21 = sld [smem:[#allocation30_spill]] }
  0x6a   : > { %s3760_s27 = sld [smem:[#allocation31_spill]]  ;;  %s1341_s5 = scalar_lea.vmem %s3754_s28, %s3385_s22 }
  0x6b   : > { %3761 = sst [smem:[#allocation47_spill]] %s3422_s25  ;;  %s3446_s30 = scalar_lea.vmem %s3755_s0, %s2950_s11 }
  0x6c   : > { %s3762_s2 = sld [smem:[#allocation32_spill]]  ;;  %s1349_s6 = scalar_lea.vmem %s3756_s20, %s3385_s22 }
  0x6d   : > { %3763 = sst [smem:[#allocation48_spill]] %s3425_s13  ;;  %s2959_s25 = sshll.u32 %s3385_s22, 5 }
  0x6e   : > { %3764 = sst [smem:[#allocation49_spill]] %s3428_s8  ;;  %s3452_s26 = scalar_lea.vmem %s3758_s17, %s2959_s25 }
  0x6f   : > { %s3765_s14 = sld [smem:[#allocation33_spill]]  ;;  %s1357_s13 = scalar_lea.vmem %s3759_s21, %s3385_s22 }
  0x70   : > { %s1360_s1 = scalar_lea.vmem %s3760_s27, %s3385_s22  ;;  %s3766_s3 = sld [smem:[#allocation34_spill]] }
  0x72   : > { %s1363_s8 = scalar_lea.vmem %s3762_s2, %s3385_s22 }
  0x75   : > { %s3462_s18 = scalar_lea.vmem %s3765_s14, %s2826_s12 }
  0x76   : > { %p2827_p7 = scmp.ne.s32.totalorder %s3766_s3, 0 }
  0x77   : > { %s3767_s4 = sld [smem:[#allocation41_spill]] (!%p2827_p7) }
  0x78   : > { %1372 = sbr.rel (%p2827_p7) target bundleno = 127 (0x7f), region = 140 }
  0x7d   : > { %v1373_v0 = vld [vmem:[%s3767_s4] sm:$0xff]  ;;  %vm1374_vm0 = vcmask 261120  }
  0x7e   : > { %1375 = vst.msk [vmem:[#allocation2] sm:$0xff] %vm1374_vm0, %v1373_v0 }
  0x7f PF: > { %s3768_s9 = sld [smem:[#allocation43_spill]]  ;;  %vm1409_vm1 = vcmask 261120   ;;  %vm1494_vm2 = vcmask 64512   ;;  %s3186_s14 = smov 112   ;;  %v1377_v26 = vlaneseq  ;;  %v3189_v30 = vmov -inf  }
  0x80   : > { %s3769_s11 = sld [smem:[#allocation44_spill]]  ;;  %s3187_s12 = smov 120   ;;  %vm1536_vm5 = vcmask 1043456   ;;  %vm1623_vm13 = vcmask 130112   ;;  %vm1691_vm14 = vcmask 195712   ;;  %vm1759_vm15 = vcmask 261312  }
  0x81   : > { %s3770_s17 = sld [smem:[#allocation10_spill]]  ;;  %s3188_s20 = smov 104   ;;  %v1378_v27 = vshrl.u32 %v1377_v26, 7  ;;  %v1380_v28 = vand.u32 127, %v1377_v26 }
  0x82   : > { %s3771_s21 = sld [smem:[#allocation11_spill]]  ;;  %s3190_s28 = smov 8  }
  0x83   : > { %s3774_s27 = sld [smem:[#allocation4_spill]]  ;;  %vm1381_vm3 = vcmp.le.s32.totalorder %v1380_v28, %v1378_v27  ;;  %s3191_s4 = smov 24  }
  0x84   : > { %s3775_s10 = sld [smem:[#allocation40_spill]]  ;;  %v1382_v31 = vsel %vm1381_vm3, 0.0, %v3189_v30 }
  0x85   : > { %v2961_v1 = vld [vmem:[%s3768_s9 + $0x8] sm:$0xff]  ;;  %v2960_v3 = vld [vmem:[%s3768_s9] sm:$0xff]  ;;  %s3776_s15 = sld [smem:[#allocation45_spill]]  ;;  %s3192_s9 = smov 16  }
  0x86   : > { %v2963_v2 = vld [vmem:[%s3769_s11 + $0x8] sm:$0xff]  ;;  %v2962_v4 = vld [vmem:[%s3769_s11] sm:$0xff]  ;;  %1419 = vmatpush.bf16.msra.mxu0 %v2961_v1  ;;  %s3778_s0 = sld [smem:[#allocation12_spill]] }
  0x87   : > { %1452 = vmatpush.bf16.msra.mxu1 %v2963_v2  ;;  %v3470_v5 = vld [vmem:[#allocation2] sm:$0xff]  ;;  %s3772_s25 = scalar_lea.vmem %s3770_s17, %s3385_s22  ;;  %s3780_s2 = sld [smem:[#allocation46_spill]] }
  0x88   : > { %v1388_v6 = vpack.c.bf16 %v3470_v5, %v3470_v5  ;;  %v3060_v7 = vld [vmem:[%s3772_s25] ss:$0 sm:$0xff]  ;;  %s3773_s3 = scalar_lea.vmem %s3771_s21, %s3385_s22  ;;  %s3781_s11 = sld [smem:[#allocation14_spill]] }
  0x89   : > { %v3061_v8 = vld [vmem:[%s3773_s3] ss:$0 sm:$0xff]  ;;  %s3782_s17 = sld [smem:[#allocation48_spill]] }
  0x8a   : > { %1420 = vmatpush.bf16.msra.mxu0 %v2960_v3  ;;  %s3777_s16 = scalar_lea.vmem %s3774_s27, %s3775_s10  ;;  %s3783_s21 = sld [smem:[#allocation42_spill]] }
  0x8b   : > { %1453 = vmatpush.bf16.msra.mxu1 %v2962_v4  ;;  %v3062_v29 = vld [vmem:[%s3777_s16] ss:$0 sm:$0xff]  ;;  %v2965_v39 = vld [vmem:[%s3776_s15 + $0x8] sm:$0xff]  ;;  %s3785_s3 = sld [smem:[#allocation47_spill]] }
  0x8c   : > { %v1387_v33 = vadd.f32 %v3062_v29, %v1382_v31  ;;  %1485 = vmatpush.bf16.msra.mxu2 %v2965_v39  ;;  %v2964_v40 = vld [vmem:[%s3776_s15] sm:$0xff]  ;;  %s3779_s23 = scalar_lea.vmem %s3778_s0, %s3385_s22  ;;  %s3786_s27 = sld [smem:[#allocation21_spill]] }
  0x8d   : > { %2836 = vmatmul.msk.bf16.vlgmr.msra.gmra.mxu0 %vm1409_vm1, %v1388_v6  ;;  %v3063_v62 = vld [vmem:[%s3779_s23] ss:$0 sm:$0xff]  ;;  %s3788_s15 = sld [smem:[#allocation15_spill]] }
  0x8e   : > { %2845 = vmatmul.msk.bf16.vlgmr.msra.gmra.mxu1 %vm1409_vm1, %v1388_v6  ;;  %s3784_s25 = scalar_lea.vmem %s3781_s11, %s3385_s22  ;;  %s3789_s16 = sld [smem:[#allocation16_spill]] }
  0x8f   : > { %s3790_s0 = sld [smem:[#allocation20_spill]] }
  0x90   : > { %1486 = vmatpush.bf16.msra.mxu2 %v2964_v40 }
  0x92   : > { %s3787_s10 = scalar_lea.vmem %s3786_s27, %s3385_s22 }
  0x93   : > { %2854 = vmatmul.msk.bf16.vlgmr.msra.gmra.mxu2 %vm1409_vm1, %v1388_v6  ;;  %s3791_s23 = scalar_lea.vmem %s3788_s15, %s3385_s22 }
  0x95   : > { %s3793_s11 = scalar_lea.vmem %s3790_s0, %s3385_s22 }
 0x10a   : > { %v1422_v9 = vpop.f32.mrf.mxu0 }
 0x10b   : > { %v1455_v10 = vpop.f32.mrf.mxu1  ;;  %v1423_v11 = vadd.f32 %v3060_v7, %v1422_v9 }
 0x10c   : > { %v1456_v12 = vadd.f32 %v3061_v8, %v1455_v10 }
 0x10d   : > { %v1492_v13 = vpack.c.bf16 %v1423_v11, %v1423_v11 }
 0x10e   : > { %v1493_v14 = vpack.c.bf16 %v1456_v12, %v1456_v12 }
 0x10f   : > { %1625 = vrot.lane.b32.xlu2 %v1492_v13, %s3186_s14 }
 0x110   : > { %1627 = vrot.lane.b32.xlu1 %v1493_v14, %s3186_s14  ;;  %1558 = vrot.lane.b32.xlu0 %v1493_v14, %s3187_s12  ;;  %v1499_v15 = vsel %vm1494_vm2, %v1493_v14, 0 }
 0x111   : > { %1508 = vmatpush.bf16.xpose.msra.mxu3 %v1499_v15 }
 0x112   : > { %v1424_v16 = vpop.f32.mrf.mxu0 }
 0x113   : > { %v1457_v17 = vpop.f32.mrf.mxu1 }
 0x116   : > { %v1488_v63 = vpop.f32.mrf.mxu2 }
 0x117   : > { %1693 = vrot.lane.b32.xlu2 %v1492_v13, %s3188_s20  ;;  %v1489_v0 = vadd.f32 %v3063_v62, %v1488_v63 }
 0x118   : > { %1695 = vrot.lane.b32.xlu1 %v1493_v14, %s3188_s20  ;;  %1555 = vrot.lane.b32.xlu0 %v1492_v13, %s3187_s12 }
 0x119   : > { %2855 = vmatmul.msk.bf16.vlgmr.msra.gmra.mxu3 %vm1494_vm2, %v1492_v13  ;;  %v1532_v1 = vpack.c.bf16 %v1489_v0, %v1489_v0  ;;  %v3064_v0 = vld [vmem:[%s3784_s25] ss:$0 sm:$0xff] }
 0x11b   : > { %v1538_v3 = vsel %vm1536_vm5, %v1532_v1, 0 }
 0x11c   : > { %1547 = vmatpush.bf16.msrb.mxu0 %v1538_v3 }
 0x11e   : > { %v1490_v7 = vpop.f32.mrf.mxu2 }
 0x11f   : > { %v3193_v7 = vmov 32.0  }
 0x169   : > { %v1626_v22 = vpop.permute.xlu2 %1625 }
 0x171   : > { %v1694_v32 = vpop.permute.xlu2 %1693 }
 0x182   : > { %v1628_v18 = vpop.permute.xlu1 %1627  ;;  %v1559_v19 = vpop.permute.xlu0 %1558 }
 0x183   : > { %v1564_v20 = vsel %vm1494_vm2, %v1559_v19, 0  ;;  %v1633_v21 = vsel %vm1494_vm2, %v1628_v18, 0 }
 0x184   : > { %1573 = vmatpush.bf16.xpose.msrb.mxu1 %v1564_v20  ;;  %1642 = vmatpush.bf16.xpose.msrb.mxu3 %v1633_v21 }
 0x18a   : > { %v1696_v23 = vpop.permute.xlu1 %1695  ;;  %v1556_v24 = vpop.permute.xlu0 %1555 }
 0x18b   : > { %v1701_v25 = vsel %vm1494_vm2, %v1696_v23, 0  ;;  %2857 = vmatmul.msk.bf16.vlgmr.msrb.gmra.mxu1 %vm1494_vm2, %v1556_v24  ;;  %2859 = vmatmul.msk.bf16.vlgmr.msrb.gmra.mxu3 %vm1494_vm2, %v1626_v22 }
 0x18c   : > { %1710 = vmatpush.bf16.xpose.msra.mxu1 %v1701_v25 }
 0x19b   : > { %2861 = vmatmul.msk.bf16.vlgmr.msra.gmra.mxu1 %vm1494_vm2, %v1694_v32 }
 0x19c   : > { %v1510_v34 = vpop.f32.mrf.mxu3 }
 0x19d   : > { %v1514_v35 = vmul.f32 0.35355338, %v1510_v34 }
 0x19f   : > { %v1515_v36 = vadd.f32 %v1514_v35, %v1387_v33 }
 0x1a1   : > { %v1516_v37 = vsel %vm1494_vm2, %v1515_v36, -inf }
 0x1a2   : > { %1517 = vmax.xlane.f32.xlu1 %v1516_v37 }
 0x1a4   : > { %v1512_v38 = vpop.f32.mrf.mxu3 }
 0x208   : > { %v1575_v41 = vpop.f32.mrf.mxu1 }
 0x209   : > { %v1579_v42 = vmul.f32 0.35355338, %v1575_v41 }
 0x20b   : > { %v1580_v43 = vadd.f32 %v1579_v42, %v1387_v33 }
 0x20d   : > { %v1581_v44 = vsel %vm1494_vm2, %v1580_v43, -inf }
 0x20e   : > { %1582 = vmax.xlane.f32.xlu0 %v1581_v44  ;;  %v1644_v45 = vpop.f32.mrf.mxu3 }
 0x20f   : > { %v1648_v55 = vmul.f32 0.35355338, %v1644_v45 }
 0x210   : > { %v1577_v46 = vpop.f32.mrf.mxu1 }
 0x211   : > { %v1649_v58 = vadd.f32 %v1648_v55, %v1387_v33 }
 0x213   : > { %v1650_v61 = vsel %vm1494_vm2, %v1649_v58, -inf }
 0x215   : > { %v1518_v47 = vpop.xlane.xlu1 %1517 }
 0x216   : > { %vm1519_vm4 = vcmp.eq.f32.partialorder %v1518_v47, -inf  ;;  %v1646_v48 = vpop.f32.mrf.mxu3 }
 0x217   : > { %v1520_v49 = vsel %vm1519_vm4, 0.0, %v1518_v47 }
 0x218   : > { %v1521_v50 = vsub.f32 %v1515_v36, %v1520_v49  ;;  %v1712_v51 = vpop.f32.mrf.mxu1 }
 0x219   : > { %v1716_v52 = vmul.f32 0.35355338, %v1712_v51 }
 0x21a   : > { %v1522_v53 = vmul.f32 1.442695, %v1521_v50 }
 0x21b   : > { %v1717_v54 = vadd.f32 %v1716_v52, %v1387_v33 }
 0x21c   : > { %3077 = vpow2.f32 %v1522_v53 }
 0x21d   : > { %v1718_v56 = vsel %vm1494_vm2, %v1717_v54, -inf }
 0x21e   : > { %1719 = vmax.xlane.f32.xlu2 %v1718_v56 }
 0x220   : > { %v1714_v57 = vpop.f32.mrf.mxu1 }
 0x222   : > { %v3078_v59 = vpop.eup %3077 }
 0x223   : > { %v1524_v60 = vsel %vm1494_vm2, %v3078_v59, 0.0 }
 0x224   : > { %1525 = vadd.xlane.f32.xlu1 %v1524_v60 }
 0x226   : > { %1651 = vmax.xlane.f32.xlu2 %v1650_v61 }
 0x23e   : > { %1598 = vrot.lane.b32.xlu2 %v1532_v1, %s3187_s12 }
 0x281   : > { %v1583_v2 = vpop.xlane.xlu0 %1582 }
 0x282   : > { %vm1584_vm6 = vcmp.eq.f32.partialorder %v1583_v2, -inf }
 0x283   : > { %v1585_v4 = vsel %vm1584_vm6, 0.0, %v1583_v2  ;;  %vm1976_vm6 = vcmask 80896  }
 0x284   : > { %v1586_v6 = vsub.f32 %v1580_v43, %v1585_v4 }
 0x286   : > { %v1587_v8 = vmul.f32 1.442695, %v1586_v6 }
 0x288   : > { %3079 = vpow2.f32 %v1587_v8  ;;  %v2972_v8 = vld [vmem:[%s3782_s17 + $0x8] sm:$0xff] }
 0x289   : > { %1912 = vmatpush.bf16.msrb.mxu1 %v2972_v8 }
 0x28e   : > { %v3080_v9 = vpop.eup %3079 }
 0x28f   : > { %v1589_v10 = vsel %vm1494_vm2, %v3080_v9, 0.0 }
 0x290   : > { %1590 = vadd.xlane.f32.xlu0 %v1589_v10  ;;  %v2883_v10 = vld [vmem:[%s3783_s21] sm:$0xf] }
 0x291   : > { %v1720_v11 = vpop.xlane.xlu2 %1719 }
 0x292   : > { %vm1721_vm7 = vcmp.eq.f32.partialorder %v1720_v11, -inf }
 0x293   : > { %v1722_v12 = vsel %vm1721_vm7, 0.0, %v1720_v11  ;;  %v2968_v11 = vld [vmem:[%s3783_s21] sm:$0x10] }
 0x294   : > { %v1723_v13 = vsub.f32 %v1717_v54, %v1722_v12 }
 0x296   : > { %v1724_v14 = vmul.f32 1.442695, %v1723_v13  ;;  %v3543_v13 = vor.u32 %v2968_v11, %v2883_v10 }
 0x297   : > { %v1526_v15 = vpop.xlane.xlu1 %1525 }
 0x298   : > { %3081 = vpow2.f32 %v1724_v14  ;;  %vm1527_vm8 = vcmp.eq.f32.partialorder %v1526_v15, 0.0 }
 0x299   : > { %v1528_v16 = vsel %vm1527_vm8, 1.0, %v1526_v15  ;;  %v1652_v17 = vpop.xlane.xlu2 %1651  ;;  %vm1997_vm8 = vcmask 1044480  }
 0x29a   : > { %3083 = vrcp.f32 %v1528_v16  ;;  %vm1653_vm9 = vcmp.eq.f32.partialorder %v1652_v17, -inf }
 0x29b   : > { %v1654_v18 = vsel %vm1653_vm9, 0.0, %v1652_v17 }
 0x29c   : > { %v1655_v19 = vsub.f32 %v1649_v58, %v1654_v18  ;;  %v2967_v58 = vld [vmem:[%s3780_s2 + $0x8] sm:$0xff] }
 0x29d   : > { %1792 = vmatpush.bf16.msra.mxu3 %v2967_v58 }
 0x29e   : > { %v3082_v20 = vpop.eup %3081  ;;  %v1656_v21 = vmul.f32 1.442695, %v1655_v19 }
 0x29f   : > { %v1726_v22 = vsel %vm1494_vm2, %v3082_v20, 0.0 }
 0x2a0   : > { %v3084_v23 = vpop.eup %3083  ;;  %3085 = vpow2.f32 %v1656_v21  ;;  %1727 = vadd.xlane.f32.xlu0 %v1726_v22 }
 0x2a1   : > { %v1530_v24 = vmul.f32 %v3084_v23, %v3078_v59  ;;  %v1599_v28 = vpop.permute.xlu2 %1598  ;;  %v2966_v59 = vld [vmem:[%s3780_s2] sm:$0xff]  ;;  %v2970_v23 = vld [vmem:[%s3785_s3 + $0x8] sm:$0xff]  ;;  %s3792_s2 = scalar_lea.vmem %s3789_s16, %s3385_s22 }
 0x2a2   : > { %v1604_v29 = vsel %vm1536_vm5, %v1599_v28, 0  ;;  %1793 = vmatpush.bf16.msra.mxu3 %v2966_v59  ;;  %v3067_v28 = vld [vmem:[%s3787_s10] ss:$0 sm:$0xff] }
 0x2a3   : > { %v1531_v25 = vpack.c.bf16 %v1530_v24, %v1530_v24  ;;  %1613 = vmatpush.bf16.msrb.mxu2 %v1604_v29  ;;  %v2969_v24 = vld [vmem:[%s3785_s3] sm:$0xff] }
 0x2a5   : > { %2856 = vmatmul.msk.bf16.vlgmr.msrb.gmra.mxu0 %vm1494_vm2, %v1531_v25 }
 0x2a6   : > { %v3086_v26 = vpop.eup %3085 }
 0x2a7   : > { %v1658_v27 = vsel %vm1494_vm2, %v3086_v26, 0.0 }
 0x2a8   : > { %1659 = vadd.xlane.f32.xlu1 %v1658_v27 }
 0x2b4   : > { %1734 = vrot.lane.b32.xlu0 %v1532_v1, %s3188_s20 }
 0x2c1   : > { %1666 = vrot.lane.b32.xlu1 %v1532_v1, %s3186_s14 }
 0x303   : > { %v1591_v30 = vpop.xlane.xlu0 %1590 }
 0x304   : > { %vm1592_vm10 = vcmp.eq.f32.partialorder %v1591_v30, 0.0 }
 0x305   : > { %v1593_v31 = vsel %vm1592_vm10, 1.0, %v1591_v30 }
 0x306   : > { %3087 = vrcp.f32 %v1593_v31 }
 0x30c   : > { %v3088_v32 = vpop.eup %3087 }
 0x30d   : > { %v1595_v33 = vmul.f32 %v3088_v32, %v3080_v9  ;;  %v2971_v9 = vld [vmem:[%s3782_s17] sm:$0xff]  ;;  %s3794_s17 = sld [smem:[#allocation49_spill]] }
 0x30e   : > { %1913 = vmatpush.bf16.msrb.mxu1 %v2971_v9 }
 0x30f   : > { %v1596_v34 = vpack.c.bf16 %v1595_v33, %v1595_v33 }
 0x311   : > { %2858 = vmatmul.msk.bf16.vlgmr.msrb.gmra.mxu2 %vm1494_vm2, %v1596_v34  ;;  %2893 = vmatmul.msk.bf16.vlgmr.msrb.gmra.mxu1 %vm1409_vm1, %v3543_v13 }
 0x313   : > { %v1728_v35 = vpop.xlane.xlu0 %1727 }
 0x314   : > { %vm1729_vm11 = vcmp.eq.f32.partialorder %v1728_v35, 0.0 }
 0x315   : > { %v1730_v36 = vsel %vm1729_vm11, 1.0, %v1728_v35 }
 0x316   : > { %3089 = vrcp.f32 %v1730_v36 }
 0x31b   : > { %v1660_v37 = vpop.xlane.xlu1 %1659 }
 0x31c   : > { %v3090_v38 = vpop.eup %3089  ;;  %vm1661_vm12 = vcmp.eq.f32.partialorder %v1660_v37, 0.0 }
 0x31d   : > { %v1732_v40 = vmul.f32 %v3090_v38, %v3082_v20  ;;  %v1662_v41 = vsel %vm1661_vm12, 1.0, %v1660_v37 }
 0x31e   : > { %3091 = vrcp.f32 %v1662_v41  ;;  %v3065_v41 = vld [vmem:[%s3791_s23] ss:$0 sm:$0xff] }
 0x31f   : > { %v1733_v44 = vpack.c.bf16 %v1732_v40, %v1732_v40  ;;  %3093 = vrcp.f32 %v3193_v7 }
 0x322   : > { %v1549_v39 = vpop.f32.mrf.mxu0 }
 0x323   : > { %1553 = vst.msk [vmem:[#allocation3] sm:$0xff] %vm1494_vm2, %v1549_v39 }
 0x324   : > { %v3092_v46 = vpop.eup %3091 }
 0x325   : > { %v1664_v47 = vmul.f32 %v3092_v46, %v3086_v26  ;;  %v3094_v12 = vpop.eup %3093 }
 0x326   : > { %v1735_v42 = vpop.permute.xlu0 %1734  ;;  %v1804_v14 = vmul.f32 32.0, %v3094_v12  ;;  %vm1808_vm0 = vweird.f32 %v3094_v12 }
 0x327   : > { %v1740_v43 = vsel %vm1536_vm5, %v1735_v42, 0  ;;  %v1665_v50 = vpack.c.bf16 %v1664_v47, %v1664_v47 }
 0x328   : > { %1749 = vmatpush.bf16.msra.mxu2 %v1740_v43  ;;  %v3066_v43 = vld [vmem:[%s3792_s2] ss:$0 sm:$0xff] }
 0x32a   : > { %v1551_v45 = vpop.f32.mrf.mxu0 }
 0x32b   : > { %2862 = vmatmul.msk.bf16.vlgmr.msra.gmra.mxu2 %vm1494_vm2, %v1733_v44 }
 0x333   : > { %v1667_v48 = vpop.permute.xlu1 %1666 }
 0x334   : > { %v1672_v49 = vsel %vm1536_vm5, %v1667_v48, 0 }
 0x335   : > { %1681 = vmatpush.bf16.msra.mxu0 %v1672_v49 }
 0x338   : > { %2860 = vmatmul.msk.bf16.vlgmr.msra.gmra.mxu0 %vm1494_vm2, %v1665_v50  ;;  %v3068_v50 = vld [vmem:[%s3793_s11] ss:$0 sm:$0xff] }
 0x339   : > { %1871 = vmatpush.bf16.msrb.mxu0 %v2970_v23 }
 0x33d   : > { %1872 = vmatpush.bf16.msrb.mxu0 %v2969_v24  ;;  %v3069_v24 = vld [vmem:[%s1327_s7] ss:$0 sm:$0xff] }
 0x38e   : > { %v1915_v25 = vpop.f32.mrf.mxu1 }
 0x38f   : > { %v1916_v30 = vadd.f32 %v3067_v28, %v1915_v25 }
 0x394   : > { %v1615_v51 = vpop.f32.mrf.mxu2 }
 0x395   : > { %1620 = vrot.lane.b32.xlu2 %v1615_v51, %s3190_s28 }
 0x396   : > { %v1917_v31 = vpop.f32.mrf.mxu1 }
 0x397   : > { %v1918_v32 = vadd.f32 %v3067_v28, %v1917_v31 }
 0x399   : > { %v1955_v33 = vpack.c.bf16 %v1918_v32, %v1916_v30 }
 0x39b   : > { %v1960_v36 = vsel %vm1494_vm2, %v1955_v33, 0 }
 0x39c   : > { %v1617_v52 = vpop.f32.mrf.mxu2  ;;  %1969 = vmatpush.bf16.xpose.msrb.mxu3 %v1960_v36 }
 0x3ae   : > { %v1751_v53 = vpop.f32.mrf.mxu2 }
 0x3af   : > { %1756 = vrot.lane.b32.xlu2 %v1751_v53, %s3191_s4 }
 0x3b5   : > { %v1683_v54 = vpop.f32.mrf.mxu0 }
 0x3b6   : > { %1688 = vrot.lane.b32.xlu0 %v1683_v54, %s3192_s9  ;;  %v1753_v55 = vpop.f32.mrf.mxu2 }
 0x3b7   : > { %2019 = vrot.lane.b32.xlu2 %v1955_v33, %s3187_s12 }
 0x3bd   : > { %v1685_v56 = vpop.f32.mrf.mxu0 }
 0x3bf   : > { %2086 = vrot.lane.b32.xlu2 %v1955_v33, %s3186_s14 }
 0x3ef   : > { %v1621_v57 = vpop.permute.xlu2 %1620 }
 0x3f0   : > { %1624 = vst.msk [vmem:[#allocation3] sm:$0xff] %vm1623_vm13, %v1621_v57 }
 0x409   : > { %v1757_v61 = vpop.permute.xlu2 %1756 }
 0x411   : > { %v2020_v48 = vpop.permute.xlu2 %2019 }
 0x412   : > { %v2025_v49 = vsel %vm1494_vm2, %v2020_v48, 0 }
 0x413   : > { %2034 = vmatpush.bf16.xpose.msra.mxu1 %v2025_v49 }
 0x419   : > { %v2087_v51 = vpop.permute.xlu2 %2086 }
 0x41a   : > { %v2092_v52 = vsel %vm1494_vm2, %v2087_v51, 0 }
 0x428   : > { %v1689_v60 = vpop.permute.xlu0 %1688 }
 0x429   : > { %1692 = vst.msk [vmem:[#allocation3] sm:$0xff] %vm1691_vm14, %v1689_v60 }
 0x42a   : > { %1760 = vst.msk [vmem:[#allocation3] sm:$0xff] %vm1759_vm15, %v1757_v61  ;;  %v2974_v61 = vld [vmem:[%s3794_s17 + $0x8] sm:$0xff] }
 0x42b   : > { %1946 = vmatpush.bf16.msrb.mxu2 %v2974_v61 }
 0x431   : > { %v1761_v62 = vld [vmem:[#allocation3] sm:$0xff] }
 0x432   : > { %v1762_v63 = vpack.c.bf16 %v1761_v62, %v1761_v62  ;;  %v2973_v62 = vld [vmem:[%s3794_s17] sm:$0xff] }
 0x433   : > { %1947 = vmatpush.bf16.msrb.mxu2 %v2973_v62 }
 0x434   : > { %2871 = vmatmul.msk.bf16.vlgmr.msra.gmra.mxu3 %vm1409_vm1, %v1762_v63 }
 0x435   : > { %2101 = vmatpush.bf16.xpose.msra.mxu3 %v2092_v52 }
 0x436   : > { %2902 = vmatmul.msk.bf16.vlgmr.msrb.gmra.mxu2 %vm1409_vm1, %v3543_v13 }
 0x4b7   : > { %v1795_v1 = vpop.f32.mrf.mxu3 }
 0x4b8   : > { %v1796_v2 = vadd.f32 %v3064_v0, %v1795_v1 }
 0x4b9   : > { %v1949_v23 = vpop.f32.mrf.mxu2 }
 0x4ba   : > { %v1799_v3 = vadd.f32 %v1796_v2, %v3470_v5  ;;  %v1805_v5 = vsub.f32 1.0, %v1804_v14  ;;  %v1950_v25 = vadd.f32 %v3069_v24, %v1949_v23 }
 0x4bc   : > { %v1800_v4 = vsel %vm1409_vm1, %v1799_v3, 0.0  ;;  %v1806_v15 = vmul.f32 %v3094_v12, %v1805_v5 }
 0x4bd   : > { %1801 = vadd.xlane.f32.xlu1 %v1800_v4 }
 0x4be   : > { %v1807_v16 = vadd.f32 %v3094_v12, %v1806_v15 }
 0x4bf   : > { %v1797_v6 = vpop.f32.mrf.mxu3 }
 0x4c0   : > { %v3547_v17 = vsel %vm1808_vm0, %v3094_v12, %v1807_v16 }
 0x530   : > { %v1802_v18 = vpop.xlane.xlu1 %1801 }
 0x531   : > { %v1810_v19 = vmul.f32 %v3547_v17, %v1802_v18 }
 0x533   : > { %v1811_v20 = vsub.f32 %v1799_v3, %v1810_v19 }
 0x535   : > { %v1812_v21 = vmul.f32 %v1811_v20, %v1811_v20 }
 0x537   : > { %v1813_v22 = vsel %vm1409_vm1, %v1812_v21, 0.0 }
 0x538   : > { %1814 = vadd.xlane.f32.xlu0 %v1813_v22 }
 0x5ab   : > { %v1815_v26 = vpop.xlane.xlu0 %1814 }
 0x5ac   : > { %v1816_v27 = vmul.f32 %v1815_v26, %v3547_v17  ;;  %v1951_v26 = vpop.f32.mrf.mxu2 }
 0x5ae   : > { %v1817_v29 = vadd.f32 1e-05, %v1816_v27  ;;  %v1952_v27 = vadd.f32 %v3069_v24, %v1951_v26 }
 0x5b0   : > { %3095 = vrsqrt.f32 %v1817_v29  ;;  %vm1824_vm4 = vweird.f32 %v1817_v29  ;;  %v1993_v28 = vpack.c.bf16 %v1952_v27, %v1950_v25  ;;  %v3070_v27 = vld [vmem:[%s1335_s29] ss:$0 sm:$0xff] }
 0x5b2   : > { %v1999_v30 = vsel %vm1997_vm8, %v1993_v28, 0 }
 0x5b3   : > { %2008 = vmatpush.bf16.msra.mxu0 %v1999_v30 }
 0x5b6   : > { %v3096_v34 = vpop.eup %3095 }
 0x5b7   : > { %v1819_v35 = vmul.f32 %v3096_v34, %v1817_v29  ;;  %vm1825_vm3 = vweird.f32 %v3096_v34 }
 0x5b8   : > { %vm1826_vm5 = vmor %vm1824_vm4, %vm1825_vm3 }
 0x5b9   : > { %v1820_v37 = vmul.f32 %v3096_v34, %v1819_v35 }
 0x5bb   : > { %v1821_v38 = vmul.f32 0.5, %v1820_v37 }
 0x5bd   : > { %v1822_v39 = vsub.f32 1.5, %v1821_v38 }
 0x5bf   : > { %v1823_v40 = vmul.f32 %v3096_v34, %v1822_v39 }
 0x5c1   : > { %v1827_v42 = vsel %vm1826_vm5, %v3096_v34, %v1823_v40 }
 0x5c2   : > { %v1828_v44 = vmul.f32 %v1827_v42, %v1811_v20 }
 0x5c4   : > { %v1833_v45 = vmul.f32 %v3065_v41, %v1828_v44 }
 0x5c6   : > { %v3566_v46 = vadd.f32 %v3066_v43, %v1833_v45 }
 0x5c8   : > { %v1839_v47 = vpack.c.bf16 %v3566_v46, %v3566_v46 }
 0x5ca   : > { %2880 = vmatmul.msk.bf16.vlgmr.msrb.gmra.mxu0 %vm1409_vm1, %v1839_v47 }
 0x647   : > { %v1874_v53 = vpop.f32.mrf.mxu0 }
 0x648   : > { %v1875_v54 = vadd.f32 %v3068_v50, %v1874_v53 }
 0x64a   : > { %v1954_v55 = vpack.c.bf16 %v1875_v54, %v1875_v54 }
 0x64c   : > { %2150 = vrot.lane.b32.xlu1 %v1954_v55, %s3188_s20  ;;  %2016 = vrot.lane.b32.xlu2 %v1954_v55, %s3187_s12 }
 0x64d   : > { %2903 = vmatmul.msk.bf16.vlgmr.msrb.gmra.mxu3 %vm1494_vm2, %v1954_v55 }
 0x64f   : > { %v1876_v56 = vpop.f32.mrf.mxu0 }
 0x654   : > { %2152 = vrot.lane.b32.xlu2 %v1955_v33, %s3188_s20 }
 0x65c   : > { %2084 = vrot.lane.b32.xlu2 %v1954_v55, %s3186_s14 }
 0x6a6   : > { %v2017_v57 = vpop.permute.xlu2 %2016 }
 0x6a7   : > { %2905 = vmatmul.msk.bf16.vlgmr.msra.gmra.mxu1 %vm1494_vm2, %v2017_v57 }
 0x6ae   : > { %v2153_v58 = vpop.permute.xlu2 %2152 }
 0x6af   : > { %v2158_v59 = vsel %vm1494_vm2, %v2153_v58, 0 }
 0x6b0   : > { %2167 = vmatpush.bf16.xpose.msrb.mxu1 %v2158_v59 }
 0x6b6   : > { %v2085_v60 = vpop.permute.xlu2 %2084 }
 0x6b7   : > { %2907 = vmatmul.msk.bf16.vlgmr.msra.gmra.mxu3 %vm1494_vm2, %v2085_v60 }
 0x6be   : > { %v2151_v63 = vpop.permute.xlu1 %2150 }
 0x6bf   : > { %2909 = vmatmul.msk.bf16.vlgmr.msrb.gmra.mxu1 %vm1494_vm2, %v2151_v63 }
 0x6d0   : > { %v1971_v0 = vpop.f32.mrf.mxu3 }
 0x6d1   : > { %v1975_v1 = vmul.f32 0.35355338, %v1971_v0 }
 0x6d3   : > { %v1977_v2 = vsel %vm1976_vm6, %v1975_v1, -inf }
 0x6d4   : > { %1978 = vmax.xlane.f32.xlu2 %v1977_v2 }
 0x6d8   : > { %v1973_v3 = vpop.f32.mrf.mxu3 }
 0x724   : > { %v2036_v4 = vpop.f32.mrf.mxu1 }
 0x725   : > { %v2040_v6 = vmul.f32 0.35355338, %v2036_v4 }
 0x727   : > { %v2041_v7 = vsel %vm1976_vm6, %v2040_v6, -inf }
 0x728   : > { %2042 = vmax.xlane.f32.xlu0 %v2041_v7 }
 0x72c   : > { %v2038_v8 = vpop.f32.mrf.mxu1 }
 0x73a   : > { %v2103_v9 = vpop.f32.mrf.mxu3 }
 0x73b   : > { %v2107_v10 = vmul.f32 0.35355338, %v2103_v9 }
 0x73c   : > { %v2169_v11 = vpop.f32.mrf.mxu1 }
 0x73d   : > { %v2108_v12 = vsel %vm1976_vm6, %v2107_v10, -inf  ;;  %v2173_v13 = vmul.f32 0.35355338, %v2169_v11 }
 0x73e   : > { %2109 = vmax.xlane.f32.xlu0 %v2108_v12 }
 0x73f   : > { %v2174_v15 = vsel %vm1976_vm6, %v2173_v13, -inf }
 0x742   : > { %v2105_v14 = vpop.f32.mrf.mxu3 }
 0x744   : > { %v2171_v5 = vpop.f32.mrf.mxu1 }
 0x746   : > { %2175 = vmax.xlane.f32.xlu0 %v2174_v15 }
 0x747   : > { %v1979_v16 = vpop.xlane.xlu2 %1978 }
 0x748   : > { %vm1980_vm7 = vcmp.eq.f32.partialorder %v1979_v16, -inf }
 0x749   : > { %v1981_v18 = vsel %vm1980_vm7, 0.0, %v1979_v16 }
 0x74a   : > { %v1982_v19 = vsub.f32 %v1975_v1, %v1981_v18 }
 0x74c   : > { %v1983_v20 = vmul.f32 1.442695, %v1982_v19 }
 0x74e   : > { %3097 = vpow2.f32 %v1983_v20  ;;  %v2976_v20 = vld [vmem:[%s3437_s19 + $0x8] sm:$0xff] }
 0x74f   : > { %2247 = vmatpush.bf16.msrb.mxu3 %v2976_v20 }
 0x754   : > { %v3098_v21 = vpop.eup %3097 }
 0x755   : > { %v1985_v22 = vsel %vm1976_vm6, %v3098_v21, 0.0 }
 0x756   : > { %1986 = vadd.xlane.f32.xlu0 %v1985_v22  ;;  %v2975_v22 = vld [vmem:[%s3437_s19] sm:$0xff] }
 0x757   : > { %2248 = vmatpush.bf16.msrb.mxu3 %v2975_v22 }
 0x76a   : > { %2058 = vrot.lane.b32.xlu0 %v1993_v28, %s3187_s12 }
 0x772   : > { %2190 = vrot.lane.b32.xlu0 %v1993_v28, %s3188_s20 }
 0x79b   : > { %v2043_v29 = vpop.xlane.xlu0 %2042 }
 0x79c   : > { %vm2044_vm9 = vcmp.eq.f32.partialorder %v2043_v29, -inf }
 0x79d   : > { %v2045_v31 = vsel %vm2044_vm9, 0.0, %v2043_v29 }
 0x79e   : > { %v2046_v32 = vsub.f32 %v2040_v6, %v2045_v31 }
 0x7a0   : > { %v2047_v33 = vmul.f32 1.442695, %v2046_v32 }
 0x7a2   : > { %3099 = vpow2.f32 %v2047_v33 }
 0x7a8   : > { %v3100_v34 = vpop.eup %3099 }
 0x7a9   : > { %v2049_v35 = vsel %vm1976_vm6, %v3100_v34, 0.0 }
 0x7aa   : > { %2050 = vadd.xlane.f32.xlu1 %v2049_v35 }
 0x7b1   : > { %v2110_v36 = vpop.xlane.xlu0 %2109 }
 0x7b2   : > { %vm2111_vm10 = vcmp.eq.f32.partialorder %v2110_v36, -inf }
 0x7b3   : > { %v2112_v37 = vsel %vm2111_vm10, 0.0, %v2110_v36 }
 0x7b4   : > { %v2113_v38 = vsub.f32 %v2107_v10, %v2112_v37 }
 0x7b6   : > { %v2114_v39 = vmul.f32 1.442695, %v2113_v38  ;;  %v2978_v38 = vld [vmem:[%s3446_s30 + $0x8] sm:$0xff] }
 0x7b8   : > { %3101 = vpow2.f32 %v2114_v39  ;;  %v2977_v39 = vld [vmem:[%s3446_s30] sm:$0xff] }
 0x7b9   : > { %v2176_v40 = vpop.xlane.xlu0 %2175 }
 0x7ba   : > { %vm2177_vm11 = vcmp.eq.f32.partialorder %v2176_v40, -inf }
 0x7bb   : > { %v2178_v41 = vsel %vm2177_vm11, 0.0, %v2176_v40  ;;  %v2982_v40 = vld [vmem:[%s3452_s26 + $0x18] sm:$0xff] }
 0x7bc   : > { %v2179_v42 = vsub.f32 %v2173_v13, %v2178_v41  ;;  %2370 = vmatpush.bf16.msra.mxu1 %v2982_v40 }
 0x7be   : > { %v3102_v43 = vpop.eup %3101  ;;  %v2180_v44 = vmul.f32 1.442695, %v2179_v42  ;;  %v2981_v42 = vld [vmem:[%s3452_s26 + $0x10] sm:$0xff] }
 0x7bf   : > { %v2116_v45 = vsel %vm1976_vm6, %v3102_v43, 0.0 }
 0x7c0   : > { %3103 = vpow2.f32 %v2180_v44  ;;  %2117 = vadd.xlane.f32.xlu2 %v2116_v45  ;;  %2371 = vmatpush.bf16.msra.mxu1 %v2981_v42 }
 0x7c6   : > { %v3104_v47 = vpop.eup %3103 }
 0x7c7   : > { %v2182_v48 = vsel %vm1976_vm6, %v3104_v47, 0.0 }
 0x7c8   : > { %2183 = vadd.xlane.f32.xlu2 %v2182_v48 }
 0x7c9   : > { %v1987_v49 = vpop.xlane.xlu0 %1986 }
 0x7ca   : > { %vm1988_vm12 = vcmp.eq.f32.partialorder %v1987_v49, 0.0 }
 0x7cb   : > { %v1989_v50 = vsel %vm1988_vm12, 1.0, %v1987_v49 }
 0x7cc   : > { %3105 = vrcp.f32 %v1989_v50 }
 0x7d2   : > { %v3106_v51 = vpop.eup %3105 }
 0x7d3   : > { %v1991_v52 = vmul.f32 %v3106_v51, %v3098_v21  ;;  %v3071_v51 = vld [vmem:[%s1338_s24] ss:$0 sm:$0xff] }
 0x7d5   : > { %v1992_v53 = vpack.c.bf16 %v1991_v52, %v1991_v52 }
 0x7d7   : > { %2904 = vmatmul.msk.bf16.vlgmr.msra.gmra.mxu0 %vm1976_vm6, %v1992_v53  ;;  %v3072_v53 = vld [vmem:[%s1341_s5] ss:$0 sm:$0xff] }
 0x7dc   : > { %v2059_v54 = vpop.permute.xlu0 %2058 }
 0x7dd   : > { %v2064_v55 = vsel %vm1997_vm8, %v2059_v54, 0 }
 0x7de   : > { %2073 = vmatpush.bf16.msra.mxu2 %v2064_v55 }
 0x7e0   : > { %2124 = vrot.lane.b32.xlu2 %v1993_v28, %s3186_s14 }
 0x7e4   : > { %v2191_v56 = vpop.permute.xlu0 %2190 }
 0x7e5   : > { %v2196_v57 = vsel %vm1997_vm8, %v2191_v56, 0 }
 0x7e6   : > { %2205 = vmatpush.bf16.msrb.mxu2 %v2196_v57 }
 0x81d   : > { %v2051_v58 = vpop.xlane.xlu1 %2050 }
 0x81e   : > { %vm2052_vm0 = vcmp.eq.f32.partialorder %v2051_v58, 0.0 }
 0x81f   : > { %v2053_v59 = vsel %vm2052_vm0, 1.0, %v2051_v58  ;;  %v2980_v58 = vld [vmem:[%s3452_s26 + $0x8] sm:$0xff] }
 0x820   : > { %3107 = vrcp.f32 %v2053_v59  ;;  %2372 = vmatpush.bf16.msra.mxu1 %v2980_v58  ;;  %v2979_v59 = vld [vmem:[%s3452_s26] sm:$0xff] }
 0x824   : > { %2373 = vmatpush.bf16.msra.mxu1 %v2979_v59 }
 0x826   : > { %v3108_v60 = vpop.eup %3107 }
 0x827   : > { %v2055_v61 = vmul.f32 %v3108_v60, %v3100_v34  ;;  %v3073_v60 = vld [vmem:[%s1349_s6] ss:$0 sm:$0xff] }
 0x829   : > { %v2056_v62 = vpack.c.bf16 %v2055_v61, %v2055_v61 }
 0x82b   : > { %2906 = vmatmul.msk.bf16.vlgmr.msra.gmra.mxu2 %vm1976_vm6, %v2056_v62 }
 0x833   : > { %v2118_v63 = vpop.xlane.xlu2 %2117 }
 0x834   : > { %vm2119_vm3 = vcmp.eq.f32.partialorder %v2118_v63, 0.0 }
 0x835   : > { %v2120_v0 = vsel %vm2119_vm3, 1.0, %v2118_v63 }
 0x836   : > { %3109 = vrcp.f32 %v2120_v0 }
 0x83b   : > { %v2184_v1 = vpop.xlane.xlu2 %2183 }
 0x83c   : > { %vm2185_vm4 = vcmp.eq.f32.partialorder %v2184_v1, 0.0  ;;  %v3110_v3 = vpop.eup %3109 }
 0x83d   : > { %v2186_v2 = vsel %vm2185_vm4, 1.0, %v2184_v1  ;;  %v2122_v4 = vmul.f32 %v3110_v3, %v3102_v43 }
 0x83e   : > { %3111 = vrcp.f32 %v2186_v2  ;;  %v3074_v2 = vld [vmem:[%s1357_s13] ss:$0 sm:$0xff]  ;;  %s3803_s13 = sld [smem:[#allocation34_spill]] }
 0x83f   : > { %v2123_v10 = vpack.c.bf16 %v2122_v4, %v2122_v4 }
 0x843   : > { %v2125_v6 = vpop.permute.xlu2 %2124 }
 0x844   : > { %v3112_v7 = vpop.eup %3111  ;;  %v2130_v8 = vsel %vm1997_vm8, %v2125_v6, 0  ;;  %p2946_p8 = scmp.ne.s32.totalorder %s3803_s13, 1 }
 0x845   : > { %v2188_v9 = vmul.f32 %v3112_v7, %v3104_v47  ;;  %2139 = vmatpush.bf16.msrb.mxu0 %v2130_v8 }
 0x847   : > { %v2189_v11 = vpack.c.bf16 %v2188_v9, %v2188_v9 }
 0x848   : > { %2908 = vmatmul.msk.bf16.vlgmr.msrb.gmra.mxu0 %vm1976_vm6, %v2123_v10 }
 0x849   : > { %2910 = vmatmul.msk.bf16.vlgmr.msrb.gmra.mxu2 %vm1976_vm6, %v2189_v11  ;;  %2317 = vmatpush.bf16.msra.mxu0 %v2978_v38 }
 0x84d   : > { %2318 = vmatpush.bf16.msra.mxu0 %v2977_v39 }
 0x854   : > { %v2010_v12 = vpop.f32.mrf.mxu0 }
 0x855   : > { %2014 = vst.msk [vmem:[#allocation3] sm:$0xff] %vm1494_vm2, %v2010_v12 }
 0x85c   : > { %v2012_v13 = vpop.f32.mrf.mxu0 }
 0x8ae   : > { %v2075_v14 = vpop.f32.mrf.mxu2 }
 0x8af   : > { %2080 = vrot.lane.b32.xlu0 %v2075_v14, %s3190_s28 }
 0x8b6   : > { %v2077_v5 = vpop.f32.mrf.mxu2 }
 0x8c5   : > { %v2141_v15 = vpop.f32.mrf.mxu0 }
 0x8c6   : > { %2146 = vrot.lane.b32.xlu1 %v2141_v15, %s3192_s9 }
 0x8cc   : > { %v2207_v16 = vpop.f32.mrf.mxu2 }
 0x8cd   : > { %v2143_v18 = vpop.f32.mrf.mxu0  ;;  %2212 = vrot.lane.b32.xlu0 %v2207_v16, %s3191_s4 }
 0x8d4   : > { %v2209_v19 = vpop.f32.mrf.mxu2 }
 0x921   : > { %v2081_v21 = vpop.permute.xlu0 %2080 }
 0x922   : > { %2083 = vst.msk [vmem:[#allocation3] sm:$0xff] %vm1623_vm13, %v2081_v21 }
 0x938   : > { %v2147_v23 = vpop.permute.xlu1 %2146 }
 0x939   : > { %2149 = vst.msk [vmem:[#allocation3] sm:$0xff] %vm1691_vm14, %v2147_v23  ;;  %v3075_v23 = vld [vmem:[%s1360_s1] ss:$0 sm:$0xff] }
 0x93f   : > { %v2213_v24 = vpop.permute.xlu0 %2212 }
 0x940   : > { %2215 = vst.msk [vmem:[#allocation3] sm:$0xff] %vm1759_vm15, %v2213_v24  ;;  %vm2362_vm15 = vcmask 523264  }
 0x947   : > { %v2216_v25 = vld [vmem:[#allocation3] sm:$0xff] }
 0x948   : > { %v2217_v26 = vpack.c.bf16 %v2216_v25, %v2216_v25  ;;  %v3076_v25 = vld [vmem:[%s1363_s8] ss:$0 sm:$0xff] }
 0x94a   : > { %2919 = vmatmul.msk.bf16.vlgmr.msrb.gmra.mxu3 %vm1409_vm1, %v2217_v26 }
 0x9cd   : > { %v2250_v28 = vpop.f32.mrf.mxu3 }
 0x9ce   : > { %v2251_v29 = vadd.f32 %v3070_v27, %v2250_v28 }
 0x9d0   : > { %v2254_v30 = vadd.f32 %v2251_v29, %v3566_v46 }
 0x9d2   : > { %v2255_v31 = vsel %vm1409_vm1, %v2254_v30, 0.0 }
 0x9d3   : > { %2256 = vadd.xlane.f32.xlu0 %v2255_v31 }
 0x9d5   : > { %v2252_v32 = vpop.f32.mrf.mxu3 }
 0xa46   : > { %v2257_v33 = vpop.xlane.xlu0 %2256 }
 0xa47   : > { %v2258_v34 = vmul.f32 %v2257_v33, %v3547_v17 }
 0xa49   : > { %v2259_v35 = vsub.f32 %v2254_v30, %v2258_v34 }
 0xa4b   : > { %v2260_v36 = vmul.f32 %v2259_v35, %v2259_v35 }
 0xa4d   : > { %v2261_v37 = vsel %vm1409_vm1, %v2260_v36, 0.0 }
 0xa4e   : > { %2262 = vadd.xlane.f32.xlu2 %v2261_v37 }
 0xac1   : > { %v2263_v46 = vpop.xlane.xlu2 %2262 }
 0xac2   : > { %v2264_v41 = vmul.f32 %v2263_v46, %v3547_v17 }
 0xac4   : > { %v2265_v43 = vadd.f32 1e-05, %v2264_v41 }
 0xac6   : > { %3113 = vrsqrt.f32 %v2265_v43  ;;  %vm2272_vm13 = vweird.f32 %v2265_v43 }
 0xacc   : > { %v3114_v44 = vpop.eup %3113 }
 0xacd   : > { %v2267_v45 = vmul.f32 %v3114_v44, %v2265_v43  ;;  %vm2273_vm2 = vweird.f32 %v3114_v44 }
 0xace   : > { %vm2274_vm14 = vmor %vm2272_vm13, %vm2273_vm2 }
 0xacf   : > { %v2268_v47 = vmul.f32 %v3114_v44, %v2267_v45 }
 0xad1   : > { %v2269_v48 = vmul.f32 0.5, %v2268_v47 }
 0xad3   : > { %v2270_v49 = vsub.f32 1.5, %v2269_v48 }
 0xad5   : > { %v2271_v50 = vmul.f32 %v3114_v44, %v2270_v49 }
 0xad7   : > { %v2275_v52 = vsel %vm2274_vm14, %v3114_v44, %v2271_v50 }
 0xad8   : > { %v2276_v54 = vmul.f32 %v2275_v52, %v2259_v35 }
 0xada   : > { %v2281_v55 = vmul.f32 %v3071_v51, %v2276_v54 }
 0xadc   : > { %v2286_v56 = vadd.f32 %v3072_v53, %v2281_v55 }
 0xade   : > { %v2287_v57 = vpack.c.bf16 %v2286_v56, %v2286_v56 }
 0xae0   : > { %2928 = vmatmul.msk.bf16.vlgmr.msra.gmra.mxu0 %vm1409_vm1, %v2287_v57 }
 0xb5d   : > { %v2320_v61 = vpop.f32.mrf.mxu0 }
 0xb5e   : > { %v2321_v62 = vadd.f32 %v3073_v60, %v2320_v61 }
 0xb60   : > { %v2324_v63 = vmax.f32 %v2321_v62, 0.0 }
 0xb62   : > { %v2325_v0 = vpack.c.bf16 %v2324_v63, %v2324_v63 }
 0xb64   : > { %2945 = vmatmul.msk.bf16.vlgmr.msra.gmra.mxu1 %vm2362_vm15, %v2325_v0 }
 0xb65   : > { %v2322_v1 = vpop.f32.mrf.mxu0 }
 0xbe1   : > { %v2375_v3 = vpop.f32.mrf.mxu1 }
 0xbe2   : > { %v2376_v4 = vadd.f32 %v3074_v2, %v2375_v3 }
 0xbe4   : > { %v2379_v6 = vadd.f32 %v2376_v4, %v2286_v56 }
 0xbe6   : > { %v2380_v7 = vsel %vm1409_vm1, %v2379_v6, 0.0 }
 0xbe7   : > { %2381 = vadd.xlane.f32.xlu1 %v2380_v7 }
 0xbe9   : > { %v2377_v8 = vpop.f32.mrf.mxu1 }
 0xc5a   : > { %v2382_v9 = vpop.xlane.xlu1 %2381 }
 0xc5b   : > { %v2383_v10 = vmul.f32 %v2382_v9, %v3547_v17 }
 0xc5d   : > { %v2384_v11 = vsub.f32 %v2379_v6, %v2383_v10 }
 0xc5f   : > { %v2385_v12 = vmul.f32 %v2384_v11, %v2384_v11 }
 0xc61   : > { %v2386_v13 = vsel %vm1409_vm1, %v2385_v12, 0.0 }
 0xc62   : > { %2387 = vadd.xlane.f32.xlu0 %v2386_v13 }
 0xcd5   : > { %v2388_v14 = vpop.xlane.xlu0 %2387 }
 0xcd6   : > { %v2389_v5 = vmul.f32 %v2388_v14, %v3547_v17 }
 0xcd8   : > { %v2390_v15 = vadd.f32 1e-05, %v2389_v5 }
 0xcda   : > { %3115 = vrsqrt.f32 %v2390_v15  ;;  %vm2397_vm6 = vweird.f32 %v2390_v15 }
 0xce0   : > { %v3116_v16 = vpop.eup %3115 }
 0xce1   : > { %v2392_v18 = vmul.f32 %v3116_v16, %v2390_v15  ;;  %vm2398_vm5 = vweird.f32 %v3116_v16 }
 0xce2   : > { %vm2399_vm7 = vmor %vm2397_vm6, %vm2398_vm5 }
 0xce3   : > { %v2393_v19 = vmul.f32 %v3116_v16, %v2392_v18 }
 0xce5   : > { %v2394_v20 = vmul.f32 0.5, %v2393_v19 }
 0xce7   : > { %v2395_v21 = vsub.f32 1.5, %v2394_v20 }
 0xce9   : > { %v2396_v22 = vmul.f32 %v3116_v16, %v2395_v21 }
 0xceb   : > { %v2400_v24 = vsel %vm2399_vm7, %v3116_v16, %v2396_v22 }
 0xcec   : > { %v2401_v26 = vmul.f32 %v2400_v24, %v2384_v11 }
 0xcee   : > { %v2406_v27 = vmul.f32 %v3075_v23, %v2401_v26  ;;  %2416 = sbr.rel (%p2946_p8) target bundleno = 3318 (0xcf6), region = 144 }
 0xcf0   : > { %v2411_v28 = vadd.f32 %v3076_v25, %v2406_v27 }
 0xcf2   : > { %2412 = vst.msk [vmem:[#allocation2] sm:$0xff] %vm1409_vm1, %v2411_v28 }
 0xcf3   : > { %v2417_v17 = vpack.c.bf16 %v2411_v28, %v2411_v28  ;;  %vm2418_vm8 = vcmask 257024  }
 0xcf5   : > { %2419 = vst.msk [vmem:[%s3462_s18] sm:$0xf] %vm2418_vm8, %v2417_v17 }
 0xcf6 PF: > { %s3804_s6 = sld [smem:[#allocation37_spill]] }
 0xcf7   : > { %s3805_s7 = sld [smem:[#allocation35_spill]] }
 0xcf8   : > { %s3806_s10 = sld [smem:[#allocation36_spill]] }
 0xcf9   : > { %s3807_s11 = sld [smem:[#allocation38_spill]] }
 0xcfa   : > { %s3808_s15 = sld [smem:[#allocation39_spill]] }
 0xcfc   : > { %s69_s16 = sadd.s32 1, %s3804_s6  }
 0xcfd   : > { %p66_p9 = scmp.ge.s32.totalorder %s69_s16, 6  }
 0xcff   :  { %68 = sbr.rel (!%p66_p9) target bundleno = 67 (0x43), region = 287 }

</bundles_post_ra>
